<compile_context>
chip_gen: v7x
topology: tpu7x:2x2x1
jax: 0.10.0
libtpu: 0.0.40
codegen_flags: <defaults>
</compile_context>

<pallas_src>
import jax
import jax.numpy as jnp
from jax.experimental import pallas as pl
from jax.experimental.pallas import tpu as pltpu

PACK = 8  # batch rows packed per lane-row: makes the 16-wide output 128 lanes


def multilayer_kernel(x_ref, w1_ref, b1_ref, w2_ref, b2_ref, w3_ref, b3_ref,
                      o_ref):
    # Packed layout: each row of x_ref holds PACK=8 consecutive batch rows
    # (8*32 = 256 lanes). Weights are block-diagonal (8 copies of the layer
    # weight), so each matmul applies the original per-layer affine map to
    # every packed batch row independently. All shapes are lane-dense
    # (multiples of 128), so loads/stores are full-width (no vst.msk).
    z = x_ref[...].astype(jnp.bfloat16)                                # (tp, 256)
    h = jnp.dot(z, w1_ref[...],
                preferred_element_type=jnp.float32) + b1_ref[...]      # (tp, 512)
    h = jnp.dot(h.astype(jnp.bfloat16), w2_ref[...],
                preferred_element_type=jnp.float32) + b2_ref[...]      # (tp, 384)
    o_ref[...] = (jnp.dot(h.astype(jnp.bfloat16), w3_ref[...],
                          preferred_element_type=jnp.float32)
                  + b3_ref[...]).astype(o_ref.dtype)                   # (tp, 128)


def _round_up(n, m):
    return ((n + m - 1) // m) * m


def _pick_tile_b(batch, max_tile=8192, min_tile=2048, min_steps=4):
    """Batch-row tile, multiple of PACK*8=64 so packed tiles stay (8,128) aligned.

    Large tiles amortize the ~0.35us per-grid-step overhead; when the batch is
    big enough we also keep >= min_steps grid steps (>=2 per TensorCore on v7x
    megacore) so pipelining and the core split survive.
    """
    b = _round_up(batch, PACK * 8)
    if b <= min_tile:
        return b                      # small batch: one step, whole batch
    tile = min(max_tile, _round_up(-(-b // min_steps), PACK * 8))
    return max(min_tile, tile)


def _block_diag(w):
    """kron(I_PACK, w): (PACK*in, PACK*out) block-diagonal replication of w."""
    return jnp.kron(jnp.eye(PACK, dtype=w.dtype), w)


def multilayer_forward(x, params, tile_b=None):
    """x: (B, 32) f32; params: list of (W f32 (in,out), b f32 (1,out))."""
    (w1, b1), (w2, b2), (w3, b3) = params
    B, in_dim = x.shape
    out_dim = w3.shape[1]

    if tile_b is None:
        tile_b = _pick_tile_b(B)
    tile_b = max(PACK * 8, _round_up(tile_b, PACK * 8))
    b_pad = _round_up(B, tile_b)
    if b_pad != B:
        x = jnp.pad(x, ((0, b_pad - B), (0, 0)))

    # Lane-dense input packing: (b_pad, 32) -> (b_pad/8, 256). Row-major
    # metadata reshape at HBM level; packed row r holds batch rows 8r..8r+7.
    xp = x.reshape(b_pad // PACK, PACK * in_dim)

    # Block-diagonal weights / tiled biases (tiny, one-time). bf16 weights for
    # full-rate MXU with f32 accumulation; biases stay f32.
    w1p = _block_diag(w1).astype(jnp.bfloat16)
    w2p = _block_diag(w2).astype(jnp.bfloat16)
    w3p = _block_diag(w3).astype(jnp.bfloat16)
    b1p = jnp.tile(b1, (1, PACK))
    b2p = jnp.tile(b2, (1, PACK))
    b3p = jnp.tile(b3, (1, PACK))

    tile_p = tile_b // PACK
    grid = (b_pad // tile_b,)
    const = lambda i: (0, 0)  # weights/biases stay resident across the grid

    outp = pl.pallas_call(
        multilayer_kernel,
        out_shape=jax.ShapeDtypeStruct((b_pad // PACK, PACK * out_dim),
                                       jnp.float32),
        grid=grid,
        in_specs=[
            pl.BlockSpec((tile_p, PACK * in_dim), lambda i: (i, 0)),
            pl.BlockSpec(w1p.shape, const),
            pl.BlockSpec(b1p.shape, const),
            pl.BlockSpec(w2p.shape, const),
            pl.BlockSpec(b2p.shape, const),
            pl.BlockSpec(w3p.shape, const),
            pl.BlockSpec(b3p.shape, const),
        ],
        out_specs=pl.BlockSpec((tile_p, PACK * out_dim), lambda i: (i, 0)),
        compiler_params=pltpu.CompilerParams(
            dimension_semantics=("parallel",),
            # Above v5e's 16 MiB scoped default, within v7x's 64 MiB physical;
            # worst-case tile (8192 rows) needs ~10 MiB.
            vmem_limit_bytes=32 * 1024 * 1024,
        ),
    )(xp, w1p, b1p, w2p, b2p, w3p, b3p)

    out = outp.reshape(b_pad, out_dim)  # free row-major unpack
    return out[:B] if b_pad != B else out


def init_linear(key, fan_in, fan_out):
    """nn.Linear-style init (uniform +-1/sqrt(fan_in)); f32 params."""
    kw, kb = jax.random.split(key)
    bound = 1.0 / (fan_in ** 0.5)
    w = jax.random.uniform(kw, (fan_in, fan_out), jnp.float32, -bound, bound)
    b = jax.random.uniform(kb, (1, fan_out), jnp.float32, -bound, bound)
    return w, b


def reference_forward_matched(x, params):
    """Pure-JAX reference with the same bf16-input / f32-accum math."""
    z = x
    for w, b in params:
        z = jnp.dot(z.astype(jnp.bfloat16), w.astype(jnp.bfloat16),
                    preferred_element_type=jnp.float32) + b
    return z


def reference_forward_f32(x, params):
    """Full-f32 reference (module semantics) for a loose sanity check."""
    z = x
    for w, b in params:
        z = z @ w + b
    return z


if __name__ == "__main__":
    key = jax.random.PRNGKey(0)
    k_x, k1, k2, k3 = jax.random.split(key, 4)

    sizes = [32, 64, 48, 16]   # layer sizes: 32 -> 64 -> 48 -> 16
    batch = 1000               # not a tile multiple -> exercises padding

    params = [
        init_linear(k1, sizes[0], sizes[1]),
        init_linear(k2, sizes[1], sizes[2]),
        init_linear(k3, sizes[2], sizes[3]),
    ]
    x = jax.random.normal(k_x, (batch, sizes[0]), jnp.float32)

    ref_matched = reference_forward_matched(x, params)
    ref_f32 = reference_forward_f32(x, params)

    # Default auto tile (single grid step for this small batch).
    out = jax.block_until_ready(multilayer_forward(x, params))
    assert out.shape == (batch, sizes[-1])
    assert jnp.allclose(out, ref_matched, atol=2e-2, rtol=2e-2)
    assert jnp.allclose(out, ref_f32, atol=1.5e-1, rtol=1e-1)

    # Small explicit tile -> multi-step grid + padded tail, same results.
    out2 = jax.block_until_ready(multilayer_forward(x, params, tile_b=192))
    assert out2.shape == (batch, sizes[-1])
    assert jnp.allclose(out2, ref_matched, atol=2e-2, rtol=2e-2)

    print("KERNEL_OK")
</pallas_src>

<mosaic_0001>
module attributes {stable_mosaic.version = 11 : i64} {
  func.func @multilayer_kernel(%arg0: i32, %arg1: memref<128x256xf32, #tpu.memory_space<vmem>>, %arg2: memref<256x512xbf16, #tpu.memory_space<vmem>>, %arg3: memref<1x512xf32, #tpu.memory_space<vmem>>, %arg4: memref<512x384xbf16, #tpu.memory_space<vmem>>, %arg5: memref<1x384xf32, #tpu.memory_space<vmem>>, %arg6: memref<384x128xbf16, #tpu.memory_space<vmem>>, %arg7: memref<1x128xf32, #tpu.memory_space<vmem>>, %arg8: memref<128x128xf32, #tpu.memory_space<vmem>>) attributes {dimension_semantics = [#tpu.dimension_semantics<parallel>], iteration_bounds = array<i64: 1>, scalar_prefetch = 0 : i64, scratch_operands = 0 : i64, tpu.core_type = #tpu.core_type<tc>, window_params = [{transform_indices = @transform_0, window_bounds = array<i64: 128, 256>}, {pipeline_mode = #tpu.pipeline_mode<synchronous>, transform_indices = @transform_1, window_bounds = array<i64: 256, 512>}, {pipeline_mode = #tpu.pipeline_mode<synchronous>, transform_indices = @transform_2, window_bounds = array<i64: 1, 512>}, {pipeline_mode = #tpu.pipeline_mode<synchronous>, transform_indices = @transform_3, window_bounds = array<i64: 512, 384>}, {pipeline_mode = #tpu.pipeline_mode<synchronous>, transform_indices = @transform_4, window_bounds = array<i64: 1, 384>}, {pipeline_mode = #tpu.pipeline_mode<synchronous>, transform_indices = @transform_5, window_bounds = array<i64: 384, 128>}, {pipeline_mode = #tpu.pipeline_mode<synchronous>, transform_indices = @transform_6, window_bounds = array<i64: 1, 128>}, {transform_indices = @transform_7, window_bounds = array<i64: 128, 128>}]} {
    %c0 = arith.constant 0 : index
    %c0_0 = arith.constant 0 : index
    %0 = vector.load %arg1[%c0, %c0_0] : memref<128x256xf32, #tpu.memory_space<vmem>>, vector<128x256xf32>
    %1 = arith.truncf %0 : vector<128x256xf32> to vector<128x256xbf16>
    %c0_1 = arith.constant 0 : index
    %c0_2 = arith.constant 0 : index
    %2 = vector.load %arg2[%c0_1, %c0_2] : memref<256x512xbf16, #tpu.memory_space<vmem>>, vector<256x512xbf16>
    %cst = arith.constant dense<0.000000e+00> : vector<128x512xf32>
    %3 = tpu.matmul %1, %2, %cst {dimension_numbers = #tpu.dot_dimension_numbers<[1], [0], [0], [1], [0, 0, 1, 1], [], []>} : vector<128x256xbf16>, vector<256x512xbf16>, vector<128x512xf32> -> vector<128x512xf32>
    %c0_3 = arith.constant 0 : index
    %c0_4 = arith.constant 0 : index
    %4 = vector.load %arg3[%c0_3, %c0_4] : memref<1x512xf32, #tpu.memory_space<vmem>>, vector<1x512xf32>
    %5 = vector.broadcast %4 : vector<1x512xf32> to vector<128x512xf32>
    %6 = arith.addf %3, %5 : vector<128x512xf32>
    %7 = arith.truncf %6 : vector<128x512xf32> to vector<128x512xbf16>
    %c0_5 = arith.constant 0 : index
    %c0_6 = arith.constant 0 : index
    %8 = vector.load %arg4[%c0_5, %c0_6] : memref<512x384xbf16, #tpu.memory_space<vmem>>, vector<512x384xbf16>
    %cst_7 = arith.constant dense<0.000000e+00> : vector<128x384xf32>
    %9 = tpu.matmul %7, %8, %cst_7 {dimension_numbers = #tpu.dot_dimension_numbers<[1], [0], [0], [1], [0, 0, 1, 1], [], []>} : vector<128x512xbf16>, vector<512x384xbf16>, vector<128x384xf32> -> vector<128x384xf32>
    %c0_8 = arith.constant 0 : index
    %c0_9 = arith.constant 0 : index
    %10 = vector.load %arg5[%c0_8, %c0_9] : memref<1x384xf32, #tpu.memory_space<vmem>>, vector<1x384xf32>
    %11 = vector.broadcast %10 : vector<1x384xf32> to vector<128x384xf32>
    %12 = arith.addf %9, %11 : vector<128x384xf32>
    %13 = arith.truncf %12 : vector<128x384xf32> to vector<128x384xbf16>
    %c0_10 = arith.constant 0 : index
    %c0_11 = arith.constant 0 : index
    %14 = vector.load %arg6[%c0_10, %c0_11] : memref<384x128xbf16, #tpu.memory_space<vmem>>, vector<384x128xbf16>
    %cst_12 = arith.constant dense<0.000000e+00> : vector<128x128xf32>
    %15 = tpu.matmul %13, %14, %cst_12 {dimension_numbers = #tpu.dot_dimension_numbers<[1], [0], [0], [1], [0, 0, 1, 1], [], []>} : vector<128x384xbf16>, vector<384x128xbf16>, vector<128x128xf32> -> vector<128x128xf32>
    %c0_13 = arith.constant 0 : index
    %c0_14 = arith.constant 0 : index
    %16 = vector.load %arg7[%c0_13, %c0_14] : memref<1x128xf32, #tpu.memory_space<vmem>>, vector<1x128xf32>
    %17 = vector.broadcast %16 : vector<1x128xf32> to vector<128x128xf32>
    %18 = arith.addf %15, %17 : vector<128x128xf32>
    %c0_15 = arith.constant 0 : index
    %c0_16 = arith.constant 0 : index
    %19 = vector.load %arg8[%c0_15, %c0_16] : memref<128x128xf32, #tpu.memory_space<vmem>>, vector<128x128xf32>
    tpu.vector_store %arg8[%c0_15, %c0_16], %18 {strides = array<i32>} : memref<128x128xf32, #tpu.memory_space<vmem>>, vector<128x128xf32>,
    return
  }
  func.func @transform_0(%arg0: i32) -> (i32, i32) {
    %c0_i32 = arith.constant 0 : i32
    %c0_i32_0 = arith.constant 0 : i32
    return %arg0, %c0_i32 : i32, i32
  }
  func.func @transform_1(%arg0: i32) -> (i32, i32) {
    %c0_i32 = arith.constant 0 : i32
    %c0_i32_0 = arith.constant 0 : i32
    %c0_i32_1 = arith.constant 0 : i32
    return %c0_i32, %c0_i32_0 : i32, i32
  }
  func.func @transform_2(%arg0: i32) -> (i32, i32) {
    %c0_i32 = arith.constant 0 : i32
    %c0_i32_0 = arith.constant 0 : i32
    %c0_i32_1 = arith.constant 0 : i32
    return %c0_i32, %c0_i32_0 : i32, i32
  }
  func.func @transform_3(%arg0: i32) -> (i32, i32) {
    %c0_i32 = arith.constant 0 : i32
    %c0_i32_0 = arith.constant 0 : i32
    %c0_i32_1 = arith.constant 0 : i32
    return %c0_i32, %c0_i32_0 : i32, i32
  }
  func.func @transform_4(%arg0: i32) -> (i32, i32) {
    %c0_i32 = arith.constant 0 : i32
    %c0_i32_0 = arith.constant 0 : i32
    %c0_i32_1 = arith.constant 0 : i32
    return %c0_i32, %c0_i32_0 : i32, i32
  }
  func.func @transform_5(%arg0: i32) -> (i32, i32) {
    %c0_i32 = arith.constant 0 : i32
    %c0_i32_0 = arith.constant 0 : i32
    %c0_i32_1 = arith.constant 0 : i32
    return %c0_i32, %c0_i32_0 : i32, i32
  }
  func.func @transform_6(%arg0: i32) -> (i32, i32) {
    %c0_i32 = arith.constant 0 : i32
    %c0_i32_0 = arith.constant 0 : i32
    %c0_i32_1 = arith.constant 0 : i32
    return %c0_i32, %c0_i32_0 : i32, i32
  }
  func.func @transform_7(%arg0: i32) -> (i32, i32) {
    %c0_i32 = arith.constant 0 : i32
    %c0_i32_0 = arith.constant 0 : i32
    return %arg0, %c0_i32 : i32, i32
  }
}

</mosaic_0001>

<bundles_post_ra>
// kernel: tpu_custom_call.1
= control target key start
LH: loop header
LB: loop body
LE: loop exit
PB: predicated region body
PF: predicated region fallthrough
CT: control target
= control target key end

     0   :  { %12 = vsyncpa [#allocation3], 0  ;;  %s3607_s0 = inlined_call_operand.hbm [shape: f32[128,256], index: 0, kind: input, shape index: {}]   ;;  %s3608_s1 = inlined_call_operand.hbm [shape: bf16[256,512], index: 1, kind: input, shape index: {}]   ;;  %s3609_s2 = inlined_call_operand.vmem [shape: f32[1,512], index: 2, kind: input, shape index: {}]   ;;  %s3610_s3 = inlined_call_operand.hbm [shape: bf16[512,384], index: 3, kind: input, shape index: {}]   ;;  %s3611_s4 = inlined_call_operand.vmem [shape: f32[1,384], index: 4, kind: input, shape index: {}]   ;;  %s3612_s5 = inlined_call_operand.hbm [shape: bf16[384,128], index: 5, kind: input, shape index: {}]   ;;  %s3613_s6 = inlined_call_operand.vmem [shape: f32[1,128], index: 6, kind: input, shape index: {}]   ;;  %s3614_s7 = inlined_call_operand.hbm [shape: f32[128,128], index: 7, kind: output, shape index: {}]  }
   0x1   :  { %13 = vsyncpa [#allocation6], 0 }
   0x2   :  { %14 = vsyncpa [#allocation9], 0 }
   0x3   :  { %15 = vsyncpa [#allocation4], 0  ;;  %s3192_s24 = smov [#allocation5]   ;;  %s3193_s26 = smov [#allocation2]  }
   0x4   :  { %s33_s25 = sshll.u32 %s3192_s24, 4  ;;  %s21_s27 = sshll.u32 %s3193_s26, 4  ;;  %s34_s25 = int_to_ptr.vmem [resolvable:$true] %s33_s25  ;;  %s3245_s27 = int_to_ptr.vmem [resolvable:$true] %s21_s27 }
   0x5   :  { %s3074_s30 = scalar_lea.hbm %s3608_s1, 8192 }
   0x6   :  { %p3075_p0 = scmp.ne.s32.totalorder %s3608_s1, %s3074_s30  ;;  %p3078_p1 = scmp.lt.u32.totalorder %s3074_s30, %s3608_s1 }
   0x8   :  { %p3080_p2 = pnand %p3078_p1, %p3075_p0 }
   0xa   :  { %3083 = shalt.err (!%p3080_p2)
}
   0xb   :  { %s3084_s12 = scalar_lea.vmem %s34_s25, 8192  ;;  %p3089_p4 = scmp.lt.s32.totalorder %s34_s25, %s34_s25 }
   0xc   :  { %p3085_p3 = scmp.ne.s32.totalorder %s34_s25, %s3084_s12  ;;  %p3090_p5 = scmp.lt.s32.totalorder %s3084_s12, %s3084_s12 }
   0xe   :  { %p3091_p6 = por %p3090_p5, %p3089_p4 }
  0x10   :  { %p3092_p7 = pnand %p3091_p6, %p3085_p3 }
  0x12   :  { %3095 = shalt.err (!%p3092_p7)
}
  0x13   :  { %s3194_s13 = smov 256   ;;  %s3195_s14 = smov 16  }
  0x14   :  { %39 = dma.hbm_to_vmem [thread:$0]  %s3608_s1, 8192, %s34_s25, [#allocation6], %s3194_s13, %s3194_s13, %s3195_s14  }
  0x15   :  { %s3096_s19 = scalar_lea.hbm %s3607_s0, 4096 }
  0x16   :  { %p3097_p8 = scmp.ne.s32.totalorder %s3607_s0, %s3096_s19  ;;  %p3100_p9 = scmp.lt.u32.totalorder %s3096_s19, %s3607_s0 }
  0x18   :  { %p3102_p10 = pnand %p3100_p9, %p3097_p8 }
  0x1a   :  { %3105 = shalt.err (!%p3102_p10)
}
  0x1b   :  { %s3106_s24 = scalar_lea.vmem %s3245_s27, 4096  ;;  %p3111_p12 = scmp.lt.s32.totalorder %s3245_s27, %s3245_s27 }
  0x1c   :  { %p3107_p11 = scmp.ne.s32.totalorder %s3245_s27, %s3106_s24  ;;  %p3112_p13 = scmp.lt.s32.totalorder %s3106_s24, %s3106_s24 }
  0x1e   :  { %p3113_p0 = por %p3112_p13, %p3111_p12 }
  0x20   :  { %p3114_p1 = pnand %p3113_p0, %p3107_p11 }
  0x22   :  { %3117 = shalt.err (!%p3114_p1)
}
  0x23   :  { %27 = dma.hbm_to_vmem [thread:$0]  %s3607_s0, 4096, %s3245_s27, [#allocation3], %s3194_s13, %s3194_s13, %s3195_s14  }
  0x24   :  { %s3196_s26 = smov [#allocation7]   ;;  %s3118_s8 = scalar_lea.hbm %s3610_s3, 12288 }
  0x25   :  { %s47_s28 = sshll.u32 %s3196_s26, 4  ;;  %p3119_p2 = scmp.ne.s32.totalorder %s3610_s3, %s3118_s8  ;;  %s48_s28 = int_to_ptr.vmem [resolvable:$true] %s47_s28 }
  0x26   :  { %p3122_p3 = scmp.lt.u32.totalorder %s3118_s8, %s3610_s3 }
  0x28   :  { %p3124_p4 = pnand %p3122_p3, %p3119_p2 }
  0x2a   :  { %3127 = shalt.err (!%p3124_p4)
}
  0x2b   :  { %s3128_s15 = scalar_lea.vmem %s48_s28, 12288  ;;  %p3133_p6 = scmp.lt.s32.totalorder %s48_s28, %s48_s28 }
  0x2c   :  { %p3129_p5 = scmp.ne.s32.totalorder %s48_s28, %s3128_s15  ;;  %p3134_p7 = scmp.lt.s32.totalorder %s3128_s15, %s3128_s15 }
  0x2e   :  { %p3135_p8 = por %p3134_p7, %p3133_p6 }
  0x30   :  { %p3136_p9 = pnand %p3135_p8, %p3129_p5 }
  0x32   :  { %3139 = shalt.err (!%p3136_p9)
}
  0x33   :  { %s3197_s0 = smov 192   ;;  %s3198_s27 = smov 12  }
  0x34   :  { %53 = dma.hbm_to_vmem [thread:$0]  %s3610_s3, 12288, %s48_s28, [#allocation6], %s3197_s0, %s3197_s0, %s3198_s27  }
  0x35   :  { %s3199_s16 = smov [#allocation8]   ;;  %s3140_s20 = scalar_lea.hbm %s3612_s5, 3072 }
  0x36   :  { %s61_s17 = sshll.u32 %s3199_s16, 4  ;;  %p3141_p10 = scmp.ne.s32.totalorder %s3612_s5, %s3140_s20  ;;  %s62_s17 = int_to_ptr.vmem [resolvable:$true] %s61_s17 }
  0x37   :  { %p3144_p11 = scmp.lt.u32.totalorder %s3140_s20, %s3612_s5 }
  0x39   :  { %p3146_p12 = pnand %p3144_p11, %p3141_p10 }
  0x3b   :  { %3149 = shalt.err (!%p3146_p12)
}
  0x3c   :  { %s3150_s1 = scalar_lea.vmem %s62_s17, 3072  ;;  %p3155_p0 = scmp.lt.s32.totalorder %s62_s17, %s62_s17 }
  0x3d   :  { %p3151_p13 = scmp.ne.s32.totalorder %s62_s17, %s3150_s1  ;;  %p3156_p1 = scmp.lt.s32.totalorder %s3150_s1, %s3150_s1 }
  0x3f   :  { %p3157_p2 = por %p3156_p1, %p3155_p0 }
  0x41   :  { %p3158_p3 = pnand %p3157_p2, %p3151_p13 }
  0x43   :  { %3161 = shalt.err (!%p3158_p3)
}
  0x44   :  { %s3200_s3 = smov 64   ;;  %s3201_s25 = smov 4  }
  0x45   :  { %67 = dma.hbm_to_vmem [thread:$0]  %s3612_s5, 3072, %s62_s17, [#allocation9], %s3200_s3, %s3200_s3, %s3201_s25  }
  0x46   :  { %3184 = dma.done.wait [#allocation3], 4096  }
  0x47   :  { %3185 = vsyncadd [#allocation3], 4294963200 }
  0x48   :  { %3186 = dma.done.wait [#allocation6], 20480  }
  0x49   :  { %3187 = vsyncadd [#allocation6], 4294946816 }
  0x4a   :  { %3188 = dma.done.wait [#allocation9], 3072  }
  0x4b   :  { %3189 = vsyncadd [#allocation9], 4294964224  ;;  %v2826_v0 = vld [vmem:[#allocation5 + $0x4] ss:$16 sps:$4 sm:$0xff]   ;;  %v2828_v1 = vld [vmem:[#allocation5] ss:$16 sps:$4 sm:$0xff]  }
  0x4c   :  { %537 = vmatprep.subr.bf16.mxu0 %v2826_v0  ;;  %v2829_v2 = vld [vmem:[#allocation5 + $0x24] ss:$16 sps:$4 sm:$0xff]   ;;  %v2831_v3 = vld [vmem:[#allocation5 + $0x20] ss:$16 sps:$4 sm:$0xff]   ;;  %v2874_v13 = vld [vmem:[#allocation5 + $0xc] ss:$16 sps:$4 sm:$0xff]  }
  0x4d   :  { %538 = vmatpush1.bf16.msra.mxu0 %v2828_v1  ;;  %v2832_v4 = vld [vmem:[#allocation5 + $0x44] ss:$16 sps:$4 sm:$0xff]   ;;  %v2834_v5 = vld [vmem:[#allocation5 + $0x40] ss:$16 sps:$4 sm:$0xff]   ;;  %v2876_v14 = vld [vmem:[#allocation5 + $0x8] ss:$16 sps:$4 sm:$0xff]   ;;  %650 = vmatprep.subr.bf16.mxu1 %v2874_v13 }
  0x4e   :  { %539 = vmatprep.subr.bf16.mxu0 %v2829_v2  ;;  %v2835_v6 = vld [vmem:[#allocation5 + $0x64] ss:$16 sps:$4 sm:$0xff]   ;;  %v2837_v7 = vld [vmem:[#allocation5 + $0x60] ss:$16 sps:$4 sm:$0xff]   ;;  %v84_v15 = vld [vmem:[#allocation2 + $0x8] sm:$0xff]  ;;  %651 = vmatpush1.bf16.msra.mxu1 %v2876_v14 }
  0x4f   :  { %v2838_v8 = vld [vmem:[#allocation5 + $0x84] ss:$16 sps:$4 sm:$0xff]   ;;  %v2840_v9 = vld [vmem:[#allocation5 + $0x80] ss:$16 sps:$4 sm:$0xff]   ;;  %v86_v18 = vld [vmem:[#allocation2 + $0x18] sm:$0xff] }
  0x50   :  { %v2841_v10 = vld [vmem:[#allocation5 + $0xa4] ss:$16 sps:$4 sm:$0xff]   ;;  %v2843_v11 = vld [vmem:[#allocation5 + $0xa0] ss:$16 sps:$4 sm:$0xff]   ;;  %v116_v19 = vpack.c.bf16 %v86_v18, %v84_v15  ;;  %v2877_v20 = vld [vmem:[#allocation5 + $0x2c] ss:$16 sps:$4 sm:$0xff]  }
  0x51   :  { %540 = vmatpush1.bf16.msra.mxu0 %v2831_v3  ;;  %v2844_v12 = vld [vmem:[#allocation5 + $0xc4] ss:$16 sps:$4 sm:$0xff]   ;;  %v2846_v16 = vld [vmem:[#allocation5 + $0xc0] ss:$16 sps:$4 sm:$0xff]   ;;  %v2879_v21 = vld [vmem:[#allocation5 + $0x28] ss:$16 sps:$4 sm:$0xff]   ;;  %652 = vmatprep.subr.bf16.mxu1 %v2877_v20 }
  0x52   :  { %541 = vmatprep.subr.bf16.mxu0 %v2832_v4  ;;  %v2847_v17 = vld [vmem:[#allocation5 + $0xe4] ss:$16 sps:$4 sm:$0xff]   ;;  %569 = vmatprep.mubr.bf16.mxu0 %v116_v19  ;;  %v2880_v22 = vld [vmem:[#allocation5 + $0x4c] ss:$16 sps:$4 sm:$0xff]   ;;  %v2849_v23 = vld [vmem:[#allocation5 + $0xe0] ss:$16 sps:$4 sm:$0xff]  }
  0x53   :  { %682 = vmatprep.mubr.bf16.mxu1 %v116_v19  ;;  %v2850_v24 = vld [vmem:[#allocation5 + $0x104] ss:$16 sps:$4 sm:$0xff]   ;;  %653 = vmatpush1.bf16.msra.mxu1 %v2879_v21  ;;  %v2882_v25 = vld [vmem:[#allocation5 + $0x48] ss:$16 sps:$4 sm:$0xff]   ;;  %v2883_v26 = vld [vmem:[#allocation5 + $0x6c] ss:$16 sps:$4 sm:$0xff]  }
  0x54   :  { %654 = vmatprep.subr.bf16.mxu1 %v2880_v22  ;;  %v2852_v27 = vld [vmem:[#allocation5 + $0x100] ss:$16 sps:$4 sm:$0xff]   ;;  %v2853_v28 = vld [vmem:[#allocation5 + $0x124] ss:$16 sps:$4 sm:$0xff]   ;;  %v2885_v29 = vld [vmem:[#allocation5 + $0x68] ss:$16 sps:$4 sm:$0xff]  }
  0x55   :  { %542 = vmatpush1.bf16.msra.mxu0 %v2834_v5  ;;  %v2886_v30 = vld [vmem:[#allocation5 + $0x8c] ss:$16 sps:$4 sm:$0xff]   ;;  %v2855_v31 = vld [vmem:[#allocation5 + $0x120] ss:$16 sps:$4 sm:$0xff]   ;;  %v2856_v32 = vld [vmem:[#allocation5 + $0x144] ss:$16 sps:$4 sm:$0xff]  }
  0x56   :  { %543 = vmatprep.subr.bf16.mxu0 %v2835_v6  ;;  %v2888_v33 = vld [vmem:[#allocation5 + $0x88] ss:$16 sps:$4 sm:$0xff]   ;;  %v2889_v34 = vld [vmem:[#allocation5 + $0xac] ss:$16 sps:$4 sm:$0xff]   ;;  %v2858_v35 = vld [vmem:[#allocation5 + $0x140] ss:$16 sps:$4 sm:$0xff]  }
  0x57   :  { %655 = vmatpush1.bf16.msra.mxu1 %v2882_v25  ;;  %v2859_v36 = vld [vmem:[#allocation5 + $0x164] ss:$16 sps:$4 sm:$0xff]   ;;  %v2891_v37 = vld [vmem:[#allocation5 + $0xa8] ss:$16 sps:$4 sm:$0xff]   ;;  %v2892_v38 = vld [vmem:[#allocation5 + $0xcc] ss:$16 sps:$4 sm:$0xff]  }
  0x58   :  { %656 = vmatprep.subr.bf16.mxu1 %v2883_v26  ;;  %v2861_v39 = vld [vmem:[#allocation5 + $0x160] ss:$16 sps:$4 sm:$0xff]   ;;  %v2862_v40 = vld [vmem:[#allocation5 + $0x184] ss:$16 sps:$4 sm:$0xff]   ;;  %v2894_v41 = vld [vmem:[#allocation5 + $0xc8] ss:$16 sps:$4 sm:$0xff]  }
  0x59   :  { %544 = vmatpush1.bf16.msra.mxu0 %v2837_v7  ;;  %v2895_v42 = vld [vmem:[#allocation5 + $0xec] ss:$16 sps:$4 sm:$0xff]   ;;  %v2864_v43 = vld [vmem:[#allocation5 + $0x180] ss:$16 sps:$4 sm:$0xff]   ;;  %v2865_v44 = vld [vmem:[#allocation5 + $0x1a4] ss:$16 sps:$4 sm:$0xff]  }
  0x5a   :  { %545 = vmatprep.subr.bf16.mxu0 %v2838_v8  ;;  %v2897_v45 = vld [vmem:[#allocation5 + $0xe8] ss:$16 sps:$4 sm:$0xff]   ;;  %v2898_v46 = vld [vmem:[#allocation5 + $0x10c] ss:$16 sps:$4 sm:$0xff]   ;;  %v2867_v47 = vld [vmem:[#allocation5 + $0x1a0] ss:$16 sps:$4 sm:$0xff]  }
  0x5b   :  { %657 = vmatpush1.bf16.msra.mxu1 %v2885_v29  ;;  %v2868_v48 = vld [vmem:[#allocation5 + $0x1c4] ss:$16 sps:$4 sm:$0xff]   ;;  %v2900_v49 = vld [vmem:[#allocation5 + $0x108] ss:$16 sps:$4 sm:$0xff]   ;;  %v2901_v50 = vld [vmem:[#allocation5 + $0x12c] ss:$16 sps:$4 sm:$0xff]  }
  0x5c   :  { %658 = vmatprep.subr.bf16.mxu1 %v2886_v30  ;;  %v2870_v51 = vld [vmem:[#allocation5 + $0x1c0] ss:$16 sps:$4 sm:$0xff]   ;;  %v2871_v52 = vld [vmem:[#allocation5 + $0x1e4] ss:$16 sps:$4 sm:$0xff]   ;;  %v2903_v56 = vld [vmem:[#allocation5 + $0x128] ss:$16 sps:$4 sm:$0xff]  }
  0x5d   :  { %546 = vmatpush1.bf16.msra.mxu0 %v2840_v9  ;;  %v2873_v53 = vld [vmem:[#allocation5 + $0x1e0] ss:$16 sps:$4 sm:$0xff]   ;;  %v88_v57 = vld [vmem:[#allocation2 + $0x28] sm:$0xff]  ;;  %v90_v59 = vld [vmem:[#allocation2 + $0x38] sm:$0xff] }
  0x5e   :  { %547 = vmatprep.subr.bf16.mxu0 %v2841_v10  ;;  %v83_v54 = vld [vmem:[#allocation2] sm:$0xff]  ;;  %v85_v55 = vld [vmem:[#allocation2 + $0x10] sm:$0xff]  ;;  %v2904_v58 = vld [vmem:[#allocation5 + $0x14c] ss:$16 sps:$4 sm:$0xff]   ;;  %v3302_v0 = vpack.c.bf16 %v90_v59, %v88_v57 }
  0x5f   :  { %659 = vmatpush1.bf16.msra.mxu1 %v2888_v33  ;;  %v2924_v60 = vld [vmem:[#allocation7 + $0x4] ss:$12 sps:$4 sm:$0xff]   ;;  %v2906_v61 = vld [vmem:[#allocation5 + $0x148] ss:$16 sps:$4 sm:$0xff]   ;;  %v3300_v62 = vpack.c.bf16 %v85_v55, %v83_v54  ;;  %v2907_v63 = vld [vmem:[#allocation5 + $0x16c] ss:$16 sps:$4 sm:$0xff]  }
  0x60   :  { %660 = vmatprep.subr.bf16.mxu1 %v2889_v34  ;;  %v2922_v1 = vld [vmem:[#allocation7] ss:$12 sps:$4 sm:$0xff]   ;;  %v2928_v2 = vld [vmem:[#allocation7 + $0x1c] ss:$12 sps:$4 sm:$0xff]   ;;  %v89_v4 = vld [vmem:[#allocation2 + $0x30] sm:$0xff] }
  0x61   :  { %548 = vmatpush1.bf16.msra.mxu0 %v2843_v11  ;;  %v87_v3 = vld [vmem:[#allocation2 + $0x20] sm:$0xff]  ;;  %v2909_v5 = vld [vmem:[#allocation5 + $0x168] ss:$16 sps:$4 sm:$0xff]   ;;  %v2910_v7 = vld [vmem:[#allocation5 + $0x18c] ss:$16 sps:$4 sm:$0xff]  }
  0x62   :  { %549 = vmatprep.subr.bf16.mxu0 %v2844_v12  ;;  %v92_v6 = vld [vmem:[#allocation2 + $0x48] sm:$0xff]  ;;  %v2926_v8 = vld [vmem:[#allocation7 + $0x18] ss:$12 sps:$4 sm:$0xff]   ;;  %v2932_v10 = vld [vmem:[#allocation7 + $0x34] ss:$12 sps:$4 sm:$0xff]   ;;  %v3306_v12 = vpack.c.bf16 %v89_v4, %v87_v3 }
  0x63   :  { %661 = vmatpush1.bf16.msra.mxu1 %v2891_v37  ;;  %v94_v9 = vld [vmem:[#allocation2 + $0x58] sm:$0xff]  ;;  %v93_v18 = vld [vmem:[#allocation2 + $0x50] sm:$0xff]  ;;  %v96_v20 = vld [vmem:[#allocation2 + $0x68] sm:$0xff] }
  0x64   :  { %662 = vmatprep.subr.bf16.mxu1 %v2892_v38  ;;  %v2912_v11 = vld [vmem:[#allocation5 + $0x188] ss:$16 sps:$4 sm:$0xff]   ;;  %v2913_v13 = vld [vmem:[#allocation5 + $0x1ac] ss:$16 sps:$4 sm:$0xff]   ;;  %v3308_v14 = vpack.c.bf16 %v94_v9, %v92_v6 }
  0x65   :  { %550 = vmatpush1.bf16.msra.mxu0 %v2846_v16  ;;  %v2930_v15 = vld [vmem:[#allocation7 + $0x30] ss:$12 sps:$4 sm:$0xff]   ;;  %v2936_v16 = vld [vmem:[#allocation7 + $0x4c] ss:$12 sps:$4 sm:$0xff]   ;;  %v2929_v37 = vld [vmem:[#allocation7 + $0x8] ss:$12 sps:$4 sm:$0xff]  }
  0x66   :  { %551 = vmatprep.subr.bf16.mxu0 %v2847_v17  ;;  %v91_v17 = vld [vmem:[#allocation2 + $0x40] sm:$0xff]  ;;  %v2915_v19 = vld [vmem:[#allocation5 + $0x1a8] ss:$16 sps:$4 sm:$0xff]   ;;  %v2916_v21 = vld [vmem:[#allocation5 + $0x1cc] ss:$16 sps:$4 sm:$0xff]  }
  0x67   :  { %663 = vmatpush1.bf16.msra.mxu1 %v2894_v41  ;;  %v98_v22 = vld [vmem:[#allocation2 + $0x78] sm:$0xff]  ;;  %v3312_v26 = vpack.c.bf16 %v93_v18, %v91_v17  ;;  %v2938_v29 = vld [vmem:[#allocation7 + $0x60] ss:$12 sps:$4 sm:$0xff]   ;;  %v2961_v3 = vld [vmem:[#allocation7 + $0x68] ss:$12 sps:$4 sm:$0xff]  }
  0x68   :  { %664 = vmatprep.subr.bf16.mxu1 %v2895_v42  ;;  %v2918_v25 = vld [vmem:[#allocation5 + $0x1c8] ss:$16 sps:$4 sm:$0xff]   ;;  %v2946_v41 = vld [vmem:[#allocation7 + $0x90] ss:$12 sps:$4 sm:$0xff]   ;;  %v2954_v55 = vld [vmem:[#allocation7 + $0xc0] ss:$12 sps:$4 sm:$0xff]  }
  0x69   :  { %552 = vmatpush1.bf16.msra.mxu0 %v2849_v23  ;;  %v2934_v23 = vld [vmem:[#allocation7 + $0x48] ss:$12 sps:$4 sm:$0xff]   ;;  %v2942_v38 = vld [vmem:[#allocation7 + $0x78] ss:$12 sps:$4 sm:$0xff]   ;;  %v2949_v54 = vld [vmem:[#allocation7 + $0x110] ss:$12 sps:$4 sm:$0xff]  }
  0x6a   :  { %553 = vmatprep.subr.bf16.mxu0 %v2850_v24  ;;  %v2940_v24 = vld [vmem:[#allocation7 + $0x64] ss:$12 sps:$4 sm:$0xff]   ;;  %v2944_v30 = vld [vmem:[#allocation7 + $0x7c] ss:$12 sps:$4 sm:$0xff]   ;;  %v2965_v4 = vld [vmem:[#allocation7 + $0x140] ss:$12 sps:$4 sm:$0xff]  }
  0x6b   :  { %665 = vmatpush1.bf16.msra.mxu1 %v2897_v45  ;;  %v2921_v33 = vld [vmem:[#allocation5 + $0x1e8] ss:$16 sps:$4 sm:$0xff]   ;;  %v2937_v45 = vld [vmem:[#allocation7 + $0x20] ss:$12 sps:$4 sm:$0xff]   ;;  %v2953_v59 = vld [vmem:[#allocation7 + $0x50] ss:$12 sps:$4 sm:$0xff]  }
  0x6c   :  { %666 = vmatprep.subr.bf16.mxu1 %v2898_v46  ;;  %v100_v34 = vld [vmem:[#allocation2 + $0x88] sm:$0xff]  ;;  %v2941_v46 = vld [vmem:[#allocation7 + $0xf8] ss:$12 sps:$4 sm:$0xff]  }
  0x6d   :  { %554 = vmatpush1.bf16.msra.mxu0 %v2852_v27  ;;  %v2919_v27 = vld [vmem:[#allocation5 + $0x1ec] ss:$16 sps:$4 sm:$0xff]   ;;  %v2977_v17 = vld [vmem:[#allocation7 + $0x98] ss:$12 sps:$4 sm:$0xff]  }
  0x6e   :  { %555 = vmatprep.subr.bf16.mxu0 %v2853_v28  ;;  %v3314_v28 = vpack.c.bf16 %v98_v22, %v96_v20  ;;  %v2960_v57 = vld [vmem:[#allocation7 + $0xdc] ss:$12 sps:$4 sm:$0xff]   ;;  %v2969_v9 = vld [vmem:[#allocation7 + $0x80] ss:$12 sps:$4 sm:$0xff]  }
  0x6f   :  { %667 = vmatpush1.bf16.msra.mxu1 %v2900_v49  ;;  %v2950_v49 = vld [vmem:[#allocation7 + $0xa8] ss:$12 sps:$4 sm:$0xff]   ;;  %v2970_v18 = vld [vmem:[#allocation7 + $0x120] ss:$12 sps:$4 sm:$0xff]  }
  0x70   :  { %668 = vmatprep.subr.bf16.mxu1 %v2901_v50  ;;  %v104_v50 = vld [vmem:[#allocation2 + $0xa8] sm:$0xff]  ;;  %v111_v22 = vld [vmem:[#allocation2 + $0xe0] sm:$0xff] }
  0x71   :  { %556 = vmatpush1.bf16.msra.mxu0 %v2855_v31  ;;  %v95_v31 = vld [vmem:[#allocation2 + $0x60] sm:$0xff]  ;;  %v2976_v20 = vld [vmem:[#allocation7 + $0x13c] ss:$12 sps:$4 sm:$0xff]  }
  0x72   :  { %557 = vmatprep.subr.bf16.mxu0 %v2856_v32  ;;  %v97_v32 = vld [vmem:[#allocation2 + $0x70] sm:$0xff] }
  0x73   :  { %669 = vmatpush1.bf16.msra.mxu1 %v2903_v56  ;;  %v3318_v42 = vpack.c.bf16 %v97_v32, %v95_v31  ;;  %v2985_v31 = vld [vmem:[#allocation7 + $0xb0] ss:$12 sps:$4 sm:$0xff]  }
  0x74   :  { %670 = vmatprep.subr.bf16.mxu1 %v2904_v58  ;;  %v2988_v32 = vld [vmem:[#allocation7 + $0x184] ss:$12 sps:$4 sm:$0xff]  }
  0x75   :  { %558 = vmatpush1.bf16.msra.mxu0 %v2858_v35  ;;  %v102_v35 = vld [vmem:[#allocation2 + $0x98] sm:$0xff] }
  0x76   :  { %559 = vmatprep.subr.bf16.mxu0 %v2859_v36  ;;  %v2925_v36 = vld [vmem:[#allocation7 + $0xc8] ss:$12 sps:$4 sm:$0xff]  }
  0x77   :  { %671 = vmatpush1.bf16.msra.mxu1 %v2906_v61  ;;  %v103_v61 = vld [vmem:[#allocation2 + $0xa0] sm:$0xff] }
  0x78   :  { %672 = vmatprep.subr.bf16.mxu1 %v2907_v63  ;;  %v2958_v63 = vld [vmem:[#allocation7 + $0xd8] ss:$12 sps:$4 sm:$0xff]  }
  0x79   :  { %560 = vmatpush1.bf16.msra.mxu0 %v2861_v39  ;;  %v2933_v39 = vld [vmem:[#allocation7 + $0xe0] ss:$12 sps:$4 sm:$0xff]  }
  0x7a   :  { %561 = vmatprep.subr.bf16.mxu0 %v2862_v40  ;;  %v2948_v40 = vld [vmem:[#allocation7 + $0x94] ss:$12 sps:$4 sm:$0xff]  }
  0x7b   :  { %673 = vmatpush1.bf16.msra.mxu1 %v2909_v5  ;;  %v2962_v5 = vld [vmem:[#allocation7 + $0xf0] ss:$12 sps:$4 sm:$0xff]  }
  0x7c   :  { %674 = vmatprep.subr.bf16.mxu1 %v2910_v7  ;;  %v2968_v7 = vld [vmem:[#allocation7 + $0x10c] ss:$12 sps:$4 sm:$0xff]  }
  0x7d   :  { %562 = vmatpush1.bf16.msra.mxu0 %v2864_v43  ;;  %v2952_v43 = vld [vmem:[#allocation7 + $0xac] ss:$12 sps:$4 sm:$0xff]  }
  0x7e   :  { %563 = vmatprep.subr.bf16.mxu0 %v2865_v44  ;;  %v3320_v44 = vpack.c.bf16 %v102_v35, %v100_v34  ;;  %v197_v34 = vlaneseq }
  0x7f   :  { %675 = vmatpush1.bf16.msra.mxu1 %v2912_v11  ;;  %v107_v11 = vld [vmem:[#allocation2 + $0xc0] sm:$0xff] }
  0x80   :  { %676 = vmatprep.subr.bf16.mxu1 %v2913_v13  ;;  %v2966_v13 = vld [vmem:[#allocation7 + $0x108] ss:$12 sps:$4 sm:$0xff]   ;;  %v3340_v35 = vshrl.u32 %v197_v34, 7 }
  0x81   :  { %564 = vmatpush1.bf16.msra.mxu0 %v2867_v47  ;;  %v99_v47 = vld [vmem:[#allocation2 + $0x80] sm:$0xff] }
  0x82   :  { %565 = vmatprep.subr.bf16.mxu0 %v2868_v48  ;;  %v101_v48 = vld [vmem:[#allocation2 + $0x90] sm:$0xff] }
  0x83   :  { %677 = vmatpush1.bf16.msra.mxu1 %v2915_v19  ;;  %v3326_v56 = vpack.c.bf16 %v101_v48, %v99_v47 }
  0x84   :  { %678 = vmatprep.subr.bf16.mxu1 %v2916_v21 }
  0x85   :  { %566 = vmatpush1.bf16.msra.mxu0 %v2870_v51  ;;  %v106_v51 = vld [vmem:[#allocation2 + $0xb8] sm:$0xff] }
  0x86   :  { %567 = vmatprep.subr.bf16.mxu0 %v2871_v52  ;;  %v2956_v52 = vld [vmem:[#allocation7 + $0xc4] ss:$12 sps:$4 sm:$0xff]   ;;  %v3328_v58 = vpack.c.bf16 %v106_v51, %v104_v50  ;;  %v2986_v51 = vld [vmem:[#allocation7 + $0x180] ss:$12 sps:$4 sm:$0xff]  }
  0x87   :  { %679 = vmatpush1.bf16.msra.mxu1 %v2918_v25 }
  0x88   :  { %680 = vmatprep.subr.bf16.mxu1 %v2919_v27  ;;  %v2978_v27 = vld [vmem:[#allocation7 + $0x150] ss:$12 sps:$4 sm:$0xff]  }
  0x89   :  { %568 = vmatpush1.bf16.msra.mxu0 %v2873_v53  ;;  %v2945_v53 = vld [vmem:[#allocation7 + $0x38] ss:$12 sps:$4 sm:$0xff]  }
  0x8a   :  { %1452 = vmatprep.subr.bf16.mxu0 %v2924_v60  ;;  %v2957_v60 = vld [vmem:[#allocation7 + $0x128] ss:$12 sps:$4 sm:$0xff]  }
  0x8b   :  { %681 = vmatpush1.bf16.msra.mxu1 %v2921_v33  ;;  %v2989_v33 = vld [vmem:[#allocation7 + $0x248] ss:$12 sps:$4 sm:$0xff]  }
  0x8c   :  { %570 = vmatmul.mubr.bf16.vlgmr.msra.gmra.mrb[0].mxu0 %v3300_v62  ;;  %2509 = vmatprep.subr.bf16.mxu1 %v2925_v36  ;;  %v199_v36 = vsub.s32 0, %v3340_v35 }
  0x8d   :  { %579 = vmatprep.mubr.bf16.mxu0 %v3302_v0  ;;  %1453 = vmatpush1.bf16.msra.mxu0 %v2922_v1  ;;  %v110_v1 = vld [vmem:[#allocation2 + $0xd8] sm:$0xff] }
  0x8e   :  { %1454 = vmatprep.subr.bf16.mxu0 %v2928_v2  ;;  %683 = vmatmul.mubr.bf16.vlgmr.msra.gmra.mrb[0].mxu1 %v3300_v62  ;;  %v105_v62 = vld [vmem:[#allocation2 + $0xb0] sm:$0xff] }
  0x8f   :  { %692 = vmatprep.mubr.bf16.mxu1 %v3302_v0  ;;  %2510 = vmatpush3.bf16.msra.mxu1 %v2929_v37  ;;  %v108_v0 = vld [vmem:[#allocation2 + $0xc8] sm:$0xff]  ;;  %v2964_v2 = vld [vmem:[#allocation7 + $0xf4] ss:$12 sps:$4 sm:$0xff]   ;;  %v125_v6 = vpack.c.bf16 %v105_v62, %v103_v61 }
  0x90   :  { %2511 = vmatprep.subr.bf16.mxu1 %v2933_v39  ;;  %v3346_v37 = vld [vmem:[%s3609_s2] sm:$0xf] }
  0x91   :  { %1455 = vmatpush1.bf16.msra.mxu0 %v2926_v8  ;;  %v128_v8 = vpack.c.bf16 %v110_v1, %v108_v0  ;;  %v3352_v39 = vrot.slane %v3346_v37, %v199_v36  ;;  %v3005_v0 = vld [vmem:[#allocation7 + $0x278] ss:$12 sps:$4 sm:$0xff]  }
  0x92   :  { %1456 = vmatprep.subr.bf16.mxu0 %v2932_v10  ;;  %v2973_v10 = vld [vmem:[#allocation7 + $0x158] ss:$12 sps:$4 sm:$0xff]  }
  0x93   :  { %2512 = vmatpush3.bf16.msra.mxu1 %v2937_v45 }
  0x94   :  { %580 = vmatmul.mubr.bf16.gmra.mrb[4].mxu0 %v3306_v12  ;;  %2513 = vmatprep.subr.bf16.mxu1 %v2941_v46 }
  0x95   :  { %589 = vmatprep.mubr.bf16.mxu0 %v3308_v14  ;;  %1457 = vmatpush1.bf16.msra.mxu0 %v2930_v15  ;;  %v114_v15 = vld [vmem:[#allocation2 + $0xf8] sm:$0xff] }
  0x96   :  { %1458 = vmatprep.subr.bf16.mxu0 %v2936_v16  ;;  %693 = vmatmul.mubr.bf16.gmra.mrb[4].mxu1 %v3306_v12  ;;  %v109_v12 = vld [vmem:[#allocation2 + $0xd0] sm:$0xff] }
  0x97   :  { %702 = vmatprep.mubr.bf16.mxu1 %v3308_v14  ;;  %2514 = vmatpush3.bf16.msra.mxu1 %v2945_v53  ;;  %v112_v14 = vld [vmem:[#allocation2 + $0xe8] sm:$0xff]  ;;  %v2972_v16 = vld [vmem:[#allocation7 + $0x124] ss:$12 sps:$4 sm:$0xff]   ;;  %v127_v19 = vpack.c.bf16 %v109_v12, %v107_v11  ;;  %v211_v11 = vsub.s32 3, %v3340_v35 }
  0x98   :  { %2515 = vmatprep.subr.bf16.mxu1 %v2949_v54  ;;  %v130_v21 = vpack.c.bf16 %v114_v15, %v112_v14  ;;  %v2992_v53 = vld [vmem:[#allocation7 + $0x19c] ss:$12 sps:$4 sm:$0xff]   ;;  %v2997_v54 = vld [vmem:[#allocation7 + $0x260] ss:$12 sps:$4 sm:$0xff]  }
  0x99   :  { %1459 = vmatpush1.bf16.msra.mxu0 %v2934_v23  ;;  %v113_v23 = vld [vmem:[#allocation2 + $0xf0] sm:$0xff] }
  0x9a   :  { %1460 = vmatprep.subr.bf16.mxu0 %v2940_v24  ;;  %v2974_v24 = vld [vmem:[#allocation7 + $0x138] ss:$12 sps:$4 sm:$0xff]   ;;  %v129_v25 = vpack.c.bf16 %v113_v23, %v111_v22  ;;  %v2998_v14 = vld [vmem:[#allocation7 + $0x1c8] ss:$12 sps:$4 sm:$0xff]   ;;  %v3017_v15 = vld [vmem:[#allocation7 + $0x1d0] ss:$12 sps:$4 sm:$0xff]  }
  0x9b   :  { %2516 = vmatpush3.bf16.msra.mxu1 %v2953_v59  ;;  %v3001_v59 = vld [vmem:[#allocation7 + $0x1a0] ss:$12 sps:$4 sm:$0xff]  }
  0x9c   :  { %590 = vmatmul.mubr.bf16.gmra.mrb[8].mxu0 %v3312_v26  ;;  %2517 = vmatprep.subr.bf16.mxu1 %v2957_v60 }
  0x9d   :  { %599 = vmatprep.mubr.bf16.mxu0 %v3314_v28  ;;  %1461 = vmatpush1.bf16.msra.mxu0 %v2938_v29  ;;  %v2984_v29 = vld [vmem:[#allocation7 + $0x16c] ss:$12 sps:$4 sm:$0xff]  }
  0x9e   :  { %1462 = vmatprep.subr.bf16.mxu0 %v2944_v30  ;;  %703 = vmatmul.mubr.bf16.gmra.mrb[8].mxu1 %v3312_v26  ;;  %v2980_v26 = vld [vmem:[#allocation7 + $0x154] ss:$12 sps:$4 sm:$0xff]  }
  0x9f   :  { %712 = vmatprep.mubr.bf16.mxu1 %v3314_v28  ;;  %2518 = vmatpush3.bf16.msra.mxu1 %v2961_v3  ;;  %v2981_v28 = vld [vmem:[#allocation7 + $0x170] ss:$12 sps:$4 sm:$0xff]   ;;  %v2982_v30 = vld [vmem:[#allocation7 + $0x168] ss:$12 sps:$4 sm:$0xff]  }
  0xa0   :  { %2519 = vmatprep.subr.bf16.mxu1 %v2965_v4 }
  0xa1   :  { %1463 = vmatpush1.bf16.msra.mxu0 %v2942_v38  ;;  %v203_v38 = vsub.s32 1, %v3340_v35 }
  0xa2   :  { %1464 = vmatprep.subr.bf16.mxu0 %v2948_v40 }
  0xa3   :  { %2520 = vmatpush3.bf16.msra.mxu1 %v2969_v9  ;;  %v207_v9 = vsub.s32 2, %v3340_v35 }
  0xa4   :  { %600 = vmatmul.mubr.bf16.gmra.mrb[12].mxu0 %v3318_v42  ;;  %2521 = vmatprep.subr.bf16.mxu1 %v2973_v10 }
  0xa5   :  { %609 = vmatprep.mubr.bf16.mxu0 %v3320_v44  ;;  %1465 = vmatpush1.bf16.msra.mxu0 %v2946_v41  ;;  %v3357_v41 = vrot.slane %v3346_v37, %v203_v38 }
  0xa6   :  { %1466 = vmatprep.subr.bf16.mxu0 %v2952_v43  ;;  %713 = vmatmul.mubr.bf16.gmra.mrb[12].mxu1 %v3318_v42 }
  0xa7   :  { %722 = vmatprep.mubr.bf16.mxu1 %v3320_v44  ;;  %2522 = vmatpush3.bf16.msra.mxu1 %v2977_v17 }
  0xa8   :  { %2523 = vmatprep.subr.bf16.mxu1 %v2981_v28  ;;  %v3025_v28 = vld [vmem:[#allocation7 + $0x1e8] ss:$12 sps:$4 sm:$0xff]  }
  0xa9   :  { %1467 = vmatpush1.bf16.msra.mxu0 %v2950_v49 }
  0xaa   :  { %1468 = vmatprep.subr.bf16.mxu0 %v2956_v52  ;;  %v2993_v52 = vld [vmem:[#allocation7 + $0x188] ss:$12 sps:$4 sm:$0xff]  }
  0xab   :  { %2524 = vmatpush3.bf16.msra.mxu1 %v2985_v31  ;;  %v3029_v31 = vld [vmem:[#allocation7 + $0x2c0] ss:$12 sps:$4 sm:$0xff]  }
  0xac   :  { %610 = vmatmul.mubr.bf16.gmra.mrb[16].mxu0 %v3326_v56  ;;  %2573 = vmatprep.subr.bf16.mxu1 %v2989_v33 }
  0xad   :  { %619 = vmatprep.mubr.bf16.mxu0 %v3328_v58  ;;  %1469 = vmatpush1.bf16.msra.mxu0 %v2954_v55 }
  0xae   :  { %1470 = vmatprep.subr.bf16.mxu0 %v2960_v57  ;;  %723 = vmatmul.mubr.bf16.gmra.mrb[16].mxu1 %v3326_v56 }
  0xaf   :  { %732 = vmatprep.mubr.bf16.mxu1 %v3328_v58  ;;  %v2990_v58 = vld [vmem:[#allocation7 + $0x198] ss:$12 sps:$4 sm:$0xff]  }
  0xb1   :  { %1471 = vmatpush1.bf16.msra.mxu0 %v2958_v63  ;;  %v2996_v63 = vld [vmem:[#allocation7 + $0x1b4] ss:$12 sps:$4 sm:$0xff]  }
  0xb2   :  { %1472 = vmatprep.subr.bf16.mxu0 %v2964_v2 }
  0xb4   :  { %620 = vmatmul.mubr.bf16.gmra.mrb[20].mxu0 %v125_v6 }
  0xb5   :  { %629 = vmatprep.mubr.bf16.mxu0 %v128_v8  ;;  %1473 = vmatpush1.bf16.msra.mxu0 %v2962_v5  ;;  %v2994_v5 = vld [vmem:[#allocation7 + $0x1b0] ss:$12 sps:$4 sm:$0xff]  }
  0xb6   :  { %1474 = vmatprep.subr.bf16.mxu0 %v2968_v7  ;;  %733 = vmatmul.mubr.bf16.gmra.mrb[20].mxu1 %v125_v6  ;;  %v3009_v6 = vld [vmem:[#allocation7 + $0x1b8] ss:$12 sps:$4 sm:$0xff]  }
  0xb7   :  { %742 = vmatprep.mubr.bf16.mxu1 %v128_v8  ;;  %v3000_v7 = vld [vmem:[#allocation7 + $0x1cc] ss:$12 sps:$4 sm:$0xff]   ;;  %v3013_v8 = vld [vmem:[#allocation7 + $0x290] ss:$12 sps:$4 sm:$0xff]  }
  0xb9   :  { %1475 = vmatpush1.bf16.msra.mxu0 %v2966_v13 }
  0xba   :  { %1476 = vmatprep.subr.bf16.mxu0 %v2972_v16 }
  0xbc   :  { %630 = vmatmul.mubr.bf16.gmra.mrb[24].mxu0 %v127_v19 }
  0xbd   :  { %639 = vmatprep.mubr.bf16.mxu0 %v130_v21  ;;  %1477 = vmatpush1.bf16.msra.mxu0 %v2970_v18 }
  0xbe   :  { %1478 = vmatprep.subr.bf16.mxu0 %v2976_v20  ;;  %743 = vmatmul.mubr.bf16.gmra.mrb[24].mxu1 %v127_v19  ;;  %v3004_v19 = vld [vmem:[#allocation7 + $0x1e4] ss:$12 sps:$4 sm:$0xff]   ;;  %v3021_v20 = vld [vmem:[#allocation7 + $0x2a8] ss:$12 sps:$4 sm:$0xff]  }
  0xbf   :  { %752 = vmatprep.mubr.bf16.mxu1 %v130_v21  ;;  %v3374_v21 = vrot.slane %v3346_v37, %v207_v9 }
  0xc1   :  { %1479 = vmatpush1.bf16.msra.mxu0 %v2974_v24  ;;  %v3379_v24 = vrot.slane %v3346_v37, %v211_v11  ;;  %v3014_v11 = vld [vmem:[#allocation7 + $0x228] ss:$12 sps:$4 sm:$0xff]  }
  0xc2   :  { %1480 = vmatprep.subr.bf16.mxu0 %v2980_v26 }
  0xc4   :  { %640 = vmatmul.mubr.bf16.gmra.mrb[28].mxu0 %v129_v25 }
  0xc5   :  { %1481 = vmatpush1.bf16.msra.mxu0 %v2978_v27  ;;  %v3002_v27 = vld [vmem:[#allocation7 + $0x1e0] ss:$12 sps:$4 sm:$0xff]  }
  0xc6   :  { %753 = vmatmul.mubr.bf16.gmra.mrb[28].mxu1 %v129_v25  ;;  %1482 = vmatprep.subr.bf16.mxu0 %v2984_v29 }
  0xc9   :  { %1483 = vmatpush1.bf16.msra.mxu0 %v2982_v30  ;;  %v3008_v30 = vld [vmem:[#allocation7 + $0x1fc] ss:$12 sps:$4 sm:$0xff]  }
  0xca   :  { %1565 = vmatprep.subr.bf16.mxu0 %v2988_v32 }
 0x15f   :  { %v571_v40 = vpop.f32.mrb[0].mxu0 }
 0x160   :  { %v573_v42 = vpop.f32.mrb[1].mxu0  ;;  %v572_v44 = vadd.f32 %v571_v40, %v3352_v39 }
 0x161   :  { %v575_v43 = vpop.f32.mrb[2].mxu0  ;;  %v574_v47 = vadd.f32 %v573_v42, %v3357_v41  ;;  %v684_v29 = vpop.f32.mrb[0].mxu1 }
 0x162   :  { %v576_v45 = vadd.f32 %v575_v43, %v3352_v39  ;;  %v577_v46 = vpop.f32.mrb[3].mxu0  ;;  %v685_v32 = vadd.f32 %v684_v29, %v3374_v21  ;;  %v686_v33 = vpop.f32.mrb[1].mxu1 }
 0x163   :  { %v578_v48 = vadd.f32 %v577_v46, %v3357_v41  ;;  %v687_v37 = vadd.f32 %v686_v33, %v3379_v24  ;;  %v688_v40 = vpop.f32.mrb[2].mxu1  ;;  %v3006_v46 = vld [vmem:[#allocation7 + $0x1f8] ss:$12 sps:$4 sm:$0xff]  }
 0x164   :  { %v763_v49 = vpack.c.bf16 %v576_v45, %v572_v44  ;;  %v689_v43 = vadd.f32 %v688_v40, %v3374_v21  ;;  %v690_v44 = vpop.f32.mrb[3].mxu1 }
 0x165   :  { %v764_v50 = vpack.c.bf16 %v578_v48, %v574_v47  ;;  %v3033_v47 = vld [vmem:[#allocation7 + $0x200] ss:$12 sps:$4 sm:$0xff]   ;;  %v691_v48 = vadd.f32 %v690_v44, %v3379_v24 }
 0x167   :  { %v581_v55 = vpop.f32.mrb[4].mxu0  ;;  %1484 = vmatprep.mubr.bf16.mxu0 %v764_v50  ;;  %1710 = vmatprep.mubr.bf16.mxu1 %v764_v50 }
 0x168   :  { %v583_v56 = vpop.f32.mrb[5].mxu0  ;;  %1485 = vmatmul.mubr.bf16.vlgmr.msra.gmra.mrb[32].mxu0 %v763_v49  ;;  %1711 = vmatmul.mubr.bf16.vlgmr.msra.gmra.mrb[32].mxu1 %v763_v49  ;;  %v582_v60 = vadd.f32 %v581_v55, %v3352_v39 }
 0x169   :  { %1566 = vmatpush1.bf16.msra.mxu0 %v2986_v51  ;;  %v585_v57 = vpop.f32.mrb[6].mxu0  ;;  %2574 = vmatpush3.bf16.msra.mxu1 %v2993_v52  ;;  %v584_v1 = vadd.f32 %v583_v56, %v3357_v41  ;;  %v3012_v52 = vld [vmem:[#allocation7 + $0x214] ss:$12 sps:$4 sm:$0xff]  }
 0x16a   :  { %v586_v61 = vadd.f32 %v585_v57, %v3352_v39  ;;  %v587_v62 = vpop.f32.mrb[7].mxu0  ;;  %1567 = vmatprep.subr.bf16.mxu0 %v2992_v53  ;;  %2575 = vmatprep.subr.bf16.mxu1 %v2997_v54  ;;  %v3037_v53 = vld [vmem:[#allocation7 + $0x2d8] ss:$12 sps:$4 sm:$0xff]   ;;  %v3387_v54 = vpack.c.bf16 %v689_v43, %v685_v32  ;;  %v3391_v57 = vpack.c.bf16 %v691_v48, %v687_v37  ;;  %v3028_v48 = vld [vmem:[#allocation7 + $0x274] ss:$12 sps:$4 sm:$0xff]  }
 0x16b   :  { %v588_v2 = vadd.f32 %v587_v62, %v3357_v41  ;;  %v694_v62 = vpop.f32.mrb[4].mxu1  ;;  %v3022_v43 = vld [vmem:[#allocation7 + $0x258] ss:$12 sps:$4 sm:$0xff]  }
 0x16c   :  { %v767_v3 = vpack.c.bf16 %v586_v61, %v582_v60  ;;  %v3010_v60 = vld [vmem:[#allocation7 + $0x210] ss:$12 sps:$4 sm:$0xff]   ;;  %v3041_v61 = vld [vmem:[#allocation7 + $0x218] ss:$12 sps:$4 sm:$0xff]  }
 0x16d   :  { %v768_v4 = vpack.c.bf16 %v588_v2, %v584_v1  ;;  %1568 = vmatpush1.bf16.msra.mxu0 %v2990_v58  ;;  %2576 = vmatpush3.bf16.msra.mxu1 %v3001_v59  ;;  %v695_v1 = vadd.f32 %v694_v62, %v3374_v21  ;;  %v696_v2 = vpop.f32.mrb[5].mxu1 }
 0x16e   :  { %1569 = vmatprep.subr.bf16.mxu0 %v2996_v63  ;;  %2577 = vmatprep.subr.bf16.mxu1 %v3005_v0  ;;  %v3016_v63 = vld [vmem:[#allocation7 + $0x22c] ss:$12 sps:$4 sm:$0xff]   ;;  %v3045_v0 = vld [vmem:[#allocation7 + $0x2f0] ss:$12 sps:$4 sm:$0xff]  }
 0x16f   :  { %v591_v10 = vpop.f32.mrb[8].mxu0  ;;  %1494 = vmatprep.mubr.bf16.mxu0 %v768_v4  ;;  %1718 = vmatprep.mubr.bf16.mxu1 %v768_v4  ;;  %v697_v4 = vadd.f32 %v696_v2, %v3379_v24 }
 0x170   :  { %v593_v12 = vpop.f32.mrb[9].mxu0  ;;  %1495 = vmatmul.mubr.bf16.gmra.mrb[36].mxu0 %v767_v3  ;;  %1719 = vmatmul.mubr.bf16.gmra.mrb[36].mxu1 %v767_v3  ;;  %v592_v16 = vadd.f32 %v591_v10, %v3352_v39 }
 0x171   :  { %1570 = vmatpush1.bf16.msra.mxu0 %v2994_v5  ;;  %v595_v13 = vpop.f32.mrb[10].mxu0  ;;  %2578 = vmatpush3.bf16.msra.mxu1 %v3009_v6  ;;  %v594_v22 = vadd.f32 %v593_v12, %v3357_v41  ;;  %v698_v5 = vpop.f32.mrb[6].mxu1  ;;  %v3049_v12 = vld [vmem:[#allocation7 + $0x230] ss:$12 sps:$4 sm:$0xff]  }
 0x172   :  { %v596_v17 = vadd.f32 %v595_v13, %v3352_v39  ;;  %v597_v18 = vpop.f32.mrb[11].mxu0  ;;  %1571 = vmatprep.subr.bf16.mxu0 %v3000_v7  ;;  %2579 = vmatprep.subr.bf16.mxu1 %v3013_v8  ;;  %v699_v7 = vadd.f32 %v698_v5, %v3374_v21  ;;  %v700_v8 = vpop.f32.mrb[7].mxu1  ;;  %v3030_v5 = vld [vmem:[#allocation7 + $0x288] ss:$12 sps:$4 sm:$0xff]  }
 0x173   :  { %v598_v23 = vadd.f32 %v597_v18, %v3357_v41  ;;  %v701_v13 = vadd.f32 %v700_v8, %v3379_v24 }
 0x174   :  { %v771_v25 = vpack.c.bf16 %v596_v17, %v592_v16  ;;  %v3020_v17 = vld [vmem:[#allocation7 + $0x244] ss:$12 sps:$4 sm:$0xff]   ;;  %v3399_v18 = vpack.c.bf16 %v699_v7, %v695_v1 }
 0x175   :  { %v772_v26 = vpack.c.bf16 %v598_v23, %v594_v22  ;;  %1572 = vmatpush1.bf16.msra.mxu0 %v2998_v14  ;;  %2580 = vmatpush3.bf16.msra.mxu1 %v3017_v15  ;;  %v3403_v22 = vpack.c.bf16 %v701_v13, %v697_v4 }
 0x176   :  { %1573 = vmatprep.subr.bf16.mxu0 %v3004_v19  ;;  %2581 = vmatprep.subr.bf16.mxu1 %v3021_v20 }
 0x177   :  { %v601_v34 = vpop.f32.mrb[12].mxu0  ;;  %1504 = vmatprep.mubr.bf16.mxu0 %v772_v26  ;;  %1726 = vmatprep.mubr.bf16.mxu1 %v772_v26  ;;  %v3018_v26 = vld [vmem:[#allocation7 + $0x240] ss:$12 sps:$4 sm:$0xff]  }
 0x178   :  { %v603_v42 = vpop.f32.mrb[13].mxu0  ;;  %1505 = vmatmul.mubr.bf16.gmra.mrb[40].mxu0 %v771_v25  ;;  %1727 = vmatmul.mubr.bf16.gmra.mrb[40].mxu1 %v771_v25  ;;  %v602_v49 = vadd.f32 %v601_v34, %v3352_v39 }
 0x179   :  { %1574 = vmatpush1.bf16.msra.mxu0 %v3002_v27  ;;  %v605_v45 = vpop.f32.mrb[14].mxu0  ;;  %2582 = vmatpush3.bf16.msra.mxu1 %v3025_v28  ;;  %v604_v55 = vadd.f32 %v603_v42, %v3357_v41  ;;  %v704_v27 = vpop.f32.mrb[8].mxu1  ;;  %v3024_v28 = vld [vmem:[#allocation7 + $0x25c] ss:$12 sps:$4 sm:$0xff]  }
 0x17a   :  { %v606_v50 = vadd.f32 %v605_v45, %v3352_v39  ;;  %v607_v51 = vpop.f32.mrb[15].mxu0  ;;  %1575 = vmatprep.subr.bf16.mxu0 %v3008_v30  ;;  %2583 = vmatprep.subr.bf16.mxu1 %v3029_v31  ;;  %v705_v29 = vadd.f32 %v704_v27, %v3374_v21  ;;  %v706_v30 = vpop.f32.mrb[9].mxu1 }
 0x17b   :  { %v608_v56 = vadd.f32 %v607_v51, %v3357_v41  ;;  %v707_v32 = vadd.f32 %v706_v30, %v3379_v24  ;;  %v708_v33 = vpop.f32.mrb[10].mxu1 }
 0x17c   :  { %v775_v58 = vpack.c.bf16 %v606_v50, %v602_v49  ;;  %v709_v37 = vadd.f32 %v708_v33, %v3374_v21  ;;  %v710_v40 = vpop.f32.mrb[11].mxu1 }
 0x17d   :  { %v776_v59 = vpack.c.bf16 %v608_v56, %v604_v55  ;;  %1576 = vmatpush1.bf16.msra.mxu0 %v3006_v46  ;;  %2584 = vmatpush3.bf16.msra.mxu1 %v3033_v47  ;;  %v711_v44 = vadd.f32 %v710_v40, %v3379_v24  ;;  %v3026_v56 = vld [vmem:[#allocation7 + $0x270] ss:$12 sps:$4 sm:$0xff]  }
 0x17e   :  { %1577 = vmatprep.subr.bf16.mxu0 %v3012_v52  ;;  %2585 = vmatprep.subr.bf16.mxu1 %v3037_v53  ;;  %v3411_v49 = vpack.c.bf16 %v709_v37, %v705_v29 }
 0x17f   :  { %v611_v3 = vpop.f32.mrb[16].mxu0  ;;  %1514 = vmatprep.mubr.bf16.mxu0 %v776_v59  ;;  %1734 = vmatprep.mubr.bf16.mxu1 %v776_v59  ;;  %v3415_v52 = vpack.c.bf16 %v711_v44, %v707_v32  ;;  %v3032_v59 = vld [vmem:[#allocation7 + $0x28c] ss:$12 sps:$4 sm:$0xff]   ;;  %v3044_v44 = vld [vmem:[#allocation7 + $0x2d4] ss:$12 sps:$4 sm:$0xff]  }
 0x180   :  { %v613_v6 = vpop.f32.mrb[17].mxu0  ;;  %1515 = vmatmul.mubr.bf16.gmra.mrb[44].mxu0 %v775_v58  ;;  %1735 = vmatmul.mubr.bf16.gmra.mrb[44].mxu1 %v775_v58  ;;  %v612_v14 = vadd.f32 %v611_v3, %v3352_v39  ;;  %v714_v58 = vpop.f32.mrb[12].mxu1 }
 0x181   :  { %1578 = vmatpush1.bf16.msra.mxu0 %v3010_v60  ;;  %v615_v10 = vpop.f32.mrb[18].mxu0  ;;  %2586 = vmatpush3.bf16.msra.mxu1 %v3041_v61  ;;  %v614_v19 = vadd.f32 %v613_v6, %v3357_v41  ;;  %v715_v60 = vadd.f32 %v714_v58, %v3374_v21  ;;  %v716_v61 = vpop.f32.mrb[13].mxu1 }
 0x182   :  { %v616_v15 = vadd.f32 %v615_v10, %v3352_v39  ;;  %v617_v16 = vpop.f32.mrb[19].mxu0  ;;  %1579 = vmatprep.subr.bf16.mxu0 %v3016_v63  ;;  %2587 = vmatprep.subr.bf16.mxu1 %v3045_v0  ;;  %v717_v63 = vadd.f32 %v716_v61, %v3379_v24  ;;  %v718_v0 = vpop.f32.mrb[14].mxu1 }
 0x183   :  { %v618_v20 = vadd.f32 %v617_v16, %v3357_v41  ;;  %v719_v2 = vadd.f32 %v718_v0, %v3374_v21  ;;  %v720_v3 = vpop.f32.mrb[15].mxu1 }
 0x184   :  { %v779_v23 = vpack.c.bf16 %v616_v15, %v612_v14  ;;  %v721_v6 = vadd.f32 %v720_v3, %v3379_v24 }
 0x185   :  { %v780_v25 = vpack.c.bf16 %v618_v20, %v614_v19  ;;  %1580 = vmatpush1.bf16.msra.mxu0 %v3014_v11  ;;  %2588 = vmatpush3.bf16.msra.mxu1 %v3049_v12  ;;  %v3036_v11 = vld [vmem:[#allocation7 + $0x2a4] ss:$12 sps:$4 sm:$0xff]   ;;  %v3423_v12 = vpack.c.bf16 %v719_v2, %v715_v60  ;;  %v3034_v19 = vld [vmem:[#allocation7 + $0x2a0] ss:$12 sps:$4 sm:$0xff]   ;;  %v724_v20 = vpop.f32.mrb[16].mxu1 }
 0x186   :  { %1581 = vmatprep.subr.bf16.mxu0 %v3020_v17  ;;  %v3427_v15 = vpack.c.bf16 %v721_v6, %v717_v63 }
 0x187   :  { %v621_v31 = vpop.f32.mrb[20].mxu0  ;;  %1524 = vmatprep.mubr.bf16.mxu0 %v780_v25  ;;  %1742 = vmatprep.mubr.bf16.mxu1 %v780_v25  ;;  %v725_v25 = vadd.f32 %v724_v20, %v3374_v21 }
 0x188   :  { %v623_v34 = vpop.f32.mrb[21].mxu0  ;;  %1525 = vmatmul.mubr.bf16.gmra.mrb[48].mxu0 %v779_v23  ;;  %1743 = vmatmul.mubr.bf16.gmra.mrb[48].mxu1 %v779_v23  ;;  %v622_v45 = vadd.f32 %v621_v31, %v3352_v39  ;;  %v3040_v23 = vld [vmem:[#allocation7 + $0x2bc] ss:$12 sps:$4 sm:$0xff]  }
 0x189   :  { %1582 = vmatpush1.bf16.msra.mxu0 %v3018_v26  ;;  %v625_v42 = vpop.f32.mrb[22].mxu0  ;;  %v624_v50 = vadd.f32 %v623_v34, %v3357_v41  ;;  %v726_v26 = vpop.f32.mrb[17].mxu1  ;;  %v3038_v34 = vld [vmem:[#allocation7 + $0x2b8] ss:$12 sps:$4 sm:$0xff]  }
 0x18a   :  { %v626_v46 = vadd.f32 %v625_v42, %v3352_v39  ;;  %v627_v47 = vpop.f32.mrb[23].mxu0  ;;  %1583 = vmatprep.subr.bf16.mxu0 %v3024_v28  ;;  %v727_v28 = vadd.f32 %v726_v26, %v3379_v24  ;;  %v728_v29 = vpop.f32.mrb[18].mxu1  ;;  %v3057_v26 = vld [vmem:[#allocation8 + $0x18] sm:$0xff]  }
 0x18b   :  { %v628_v51 = vadd.f32 %v627_v47, %v3357_v41  ;;  %v729_v31 = vadd.f32 %v728_v29, %v3374_v21  ;;  %v730_v32 = vpop.f32.mrb[19].mxu1  ;;  %v3060_v29 = vld [vmem:[#allocation8 + $0x80] sm:$0xff]  }
 0x18c   :  { %v783_v53 = vpack.c.bf16 %v626_v46, %v622_v45  ;;  %v731_v37 = vadd.f32 %v730_v32, %v3379_v24  ;;  %2717 = vmatprep.subr.bf16.mxu1 %v3060_v29  ;;  %v3063_v32 = vld [vmem:[#allocation8 + $0x88] sm:$0xff]  }
 0x18d   :  { %v784_v55 = vpack.c.bf16 %v628_v51, %v624_v50  ;;  %1584 = vmatpush1.bf16.msra.mxu0 %v3022_v43  ;;  %v3435_v45 = vpack.c.bf16 %v729_v31, %v725_v25  ;;  %v3062_v31 = vld [vmem:[#allocation8 + $0x28] sm:$0xff]  }
 0x18e   :  { %1585 = vmatprep.subr.bf16.mxu0 %v3028_v48  ;;  %v782_v48 = vpack.c.bf16 %v731_v37, %v727_v28  ;;  %v3059_v28 = vld [vmem:[#allocation8 + $0x20] sm:$0xff]   ;;  %v3065_v37 = vld [vmem:[#allocation8 + $0x30] sm:$0xff]  }
 0x18f   :  { %v631_v62 = vpop.f32.mrb[24].mxu0  ;;  %1534 = vmatprep.mubr.bf16.mxu0 %v784_v55  ;;  %1750 = vmatprep.mubr.bf16.mxu1 %v784_v55  ;;  %v734_v55 = vpop.f32.mrb[20].mxu1 }
 0x190   :  { %v633_v1 = vpop.f32.mrb[25].mxu0  ;;  %1535 = vmatmul.mubr.bf16.gmra.mrb[52].mxu0 %v783_v53  ;;  %1751 = vmatmul.mubr.bf16.gmra.mrb[52].mxu1 %v783_v53  ;;  %v632_v7 = vadd.f32 %v631_v62, %v3352_v39  ;;  %v3042_v53 = vld [vmem:[#allocation7 + $0x2d0] ss:$12 sps:$4 sm:$0xff]   ;;  %v735_v58 = vadd.f32 %v734_v55, %v3374_v21  ;;  %v3046_v62 = vld [vmem:[#allocation7 + $0x2e8] ss:$12 sps:$4 sm:$0xff]  }
 0x191   :  { %1586 = vmatpush1.bf16.msra.mxu0 %v3026_v56  ;;  %v635_v4 = vpop.f32.mrb[26].mxu0  ;;  %v634_v13 = vadd.f32 %v633_v1, %v3357_v41  ;;  %v3048_v56 = vld [vmem:[#allocation7 + $0x2ec] ss:$12 sps:$4 sm:$0xff]  }
 0x192   :  { %v636_v8 = vadd.f32 %v635_v4, %v3352_v39  ;;  %v637_v10 = vpop.f32.mrb[27].mxu0  ;;  %1587 = vmatprep.subr.bf16.mxu0 %v3032_v59 }
 0x193   :  { %v638_v14 = vadd.f32 %v637_v10, %v3357_v41 }
 0x194   :  { %v787_v16 = vpack.c.bf16 %v636_v8, %v632_v7 }
 0x195   :  { %v788_v17 = vpack.c.bf16 %v638_v14, %v634_v13  ;;  %1588 = vmatpush1.bf16.msra.mxu0 %v3030_v5 }
 0x196   :  { %1589 = vmatprep.subr.bf16.mxu0 %v3036_v11 }
 0x197   :  { %v641_v27 = vpop.f32.mrb[28].mxu0  ;;  %1544 = vmatprep.mubr.bf16.mxu0 %v788_v17  ;;  %1758 = vmatprep.mubr.bf16.mxu1 %v788_v17 }
 0x198   :  { %v643_v30 = vpop.f32.mrb[29].mxu0  ;;  %1545 = vmatmul.mubr.bf16.gmra.mrb[56].mxu0 %v787_v16  ;;  %1759 = vmatmul.mubr.bf16.gmra.mrb[56].mxu1 %v787_v16  ;;  %v642_v40 = vadd.f32 %v641_v27, %v3352_v39  ;;  %v3058_v27 = vld [vmem:[#allocation8 + $0x60] sm:$0xff]  }
 0x199   :  { %1590 = vmatpush1.bf16.msra.mxu0 %v3034_v19  ;;  %v645_v33 = vpop.f32.mrb[30].mxu0  ;;  %v644_v46 = vadd.f32 %v643_v30, %v3357_v41  ;;  %v3061_v30 = vld [vmem:[#allocation8 + $0x68] sm:$0xff]  }
 0x19a   :  { %v646_v42 = vadd.f32 %v645_v33, %v3352_v39  ;;  %v647_v43 = vpop.f32.mrb[31].mxu0  ;;  %1591 = vmatprep.subr.bf16.mxu0 %v3040_v23  ;;  %v736_v39 = vpop.f32.mrb[21].mxu1  ;;  %v3064_v33 = vld [vmem:[#allocation8 + $0x70] sm:$0xff]  }
 0x19b   :  { %v648_v47 = vadd.f32 %v647_v43, %v3357_v41  ;;  %v737_v59 = vadd.f32 %v736_v39, %v3379_v24  ;;  %v738_v60 = vpop.f32.mrb[22].mxu1  ;;  %v3068_v43 = vld [vmem:[#allocation8 + $0x78] sm:$0xff]  }
 0x19c   :  { %v791_v50 = vpack.c.bf16 %v646_v42, %v642_v40  ;;  %v739_v41 = vadd.f32 %v738_v60, %v3374_v21  ;;  %v740_v61 = vpop.f32.mrb[23].mxu1  ;;  %v3067_v40 = vld [vmem:[#allocation8 + $0x98] sm:$0xff]   ;;  %v3070_v42 = vld [vmem:[#allocation8 + $0xa0] sm:$0xff]  }
 0x19d   :  { %v792_v51 = vpack.c.bf16 %v648_v47, %v644_v46  ;;  %1592 = vmatpush1.bf16.msra.mxu0 %v3038_v34  ;;  %v741_v63 = vadd.f32 %v740_v61, %v3379_v24  ;;  %v744_v2 = vpop.f32.mrb[24].mxu1  ;;  %v3066_v34 = vld [vmem:[#allocation8 + $0x90] sm:$0xff]   ;;  %v3073_v47 = vld [vmem:[#allocation8 + $0xb8] sm:$0xff]  }
 0x19e   :  { %1593 = vmatprep.subr.bf16.mxu0 %v3044_v44  ;;  %v785_v0 = vpack.c.bf16 %v739_v41, %v735_v58  ;;  %v745_v3 = vadd.f32 %v744_v2, %v3374_v21  ;;  %v746_v4 = vpop.f32.mrb[25].mxu1  ;;  %v3069_v44 = vld [vmem:[#allocation8 + $0x38] sm:$0xff]   ;;  %v3072_v46 = vld [vmem:[#allocation8 + $0xb0] sm:$0xff]  }
 0x19f   :  { %1554 = vmatprep.mubr.bf16.mxu0 %v792_v51  ;;  %1766 = vmatprep.mubr.bf16.mxu1 %v792_v51  ;;  %v786_v1 = vpack.c.bf16 %v741_v63, %v737_v59  ;;  %v747_v5 = vadd.f32 %v746_v4, %v3379_v24  ;;  %v748_v6 = vpop.f32.mrb[26].mxu1 }
 0x1a0   :  { %1555 = vmatmul.mubr.bf16.gmra.mrb[60].mxu0 %v791_v50  ;;  %1767 = vmatmul.mubr.bf16.gmra.mrb[60].mxu1 %v791_v50  ;;  %v749_v7 = vadd.f32 %v748_v6, %v3374_v21  ;;  %v750_v8 = vpop.f32.mrb[27].mxu1 }
 0x1a1   :  { %1594 = vmatpush1.bf16.msra.mxu0 %v3042_v53  ;;  %1597 = vmatprep.mubr.bf16.mxu0 %v3391_v57  ;;  %v754_v13 = vpop.f32.mrb[28].mxu1 }
 0x1a2   :  { %1595 = vmatprep.subr.bf16.mxu0 %v3048_v56  ;;  %1807 = vmatprep.mubr.bf16.mxu1 %v3391_v57  ;;  %v751_v57 = vadd.f32 %v750_v8, %v3379_v24  ;;  %v789_v10 = vpack.c.bf16 %v749_v7, %v745_v3  ;;  %v755_v14 = vadd.f32 %v754_v13, %v3374_v21  ;;  %v756_v16 = vpop.f32.mrb[29].mxu1 }
 0x1a3   :  { %v757_v17 = vadd.f32 %v756_v16, %v3379_v24  ;;  %v758_v19 = vpop.f32.mrb[30].mxu1 }
 0x1a4   :  { %v790_v11 = vpack.c.bf16 %v751_v57, %v747_v5  ;;  %v760_v20 = vpop.f32.mrb[31].mxu1 }
 0x1a5   :  { %1596 = vmatpush1.bf16.msra.mxu0 %v3046_v62 }
 0x1a8   :  { %1598 = vmatmul.mubr.bf16.vlgmr.msra.gmra.mrb[32].mxu0 %v3387_v54  ;;  %1808 = vmatmul.mubr.bf16.vlgmr.msra.gmra.mrb[64].mxu1 %v3387_v54  ;;  %v759_v54 = vadd.f32 %v758_v19, %v3374_v21  ;;  %v3050_v21 = vld [vmem:[#allocation8 + $0x40] sm:$0xff]  }
 0x1a9   :  { %1607 = vmatprep.mubr.bf16.mxu0 %v3403_v22  ;;  %1815 = vmatprep.mubr.bf16.mxu1 %v3403_v22  ;;  %v761_v22 = vadd.f32 %v760_v20, %v3379_v24  ;;  %v3052_v24 = vld [vmem:[#allocation8 + $0x48] sm:$0xff]  }
 0x1aa   :  { %v793_v23 = vpack.c.bf16 %v759_v54, %v755_v14  ;;  %2637 = vmatprep.subr.bf16.mxu0 %v3050_v21  ;;  %2718 = vmatpush3.bf16.msra.mxu1 %v3060_v29  ;;  %v923_v29 = vld [vmem:[%s3611_s4] sm:$0x7] }
 0x1ab   :  { %v794_v25 = vpack.c.bf16 %v761_v22, %v757_v17  ;;  %2719 = vmatprep.subr.bf16.mxu1 %v3063_v32 }
 0x1ae   :  { %2720 = vmatpush3.bf16.msra.mxu1 %v3063_v32  ;;  %v3502_v32 = vrot.slane %v923_v29, %v207_v9 }
 0x1af   :  { %2721 = vmatprep.subr.bf16.mxu1 %v3066_v34 }
 0x1b0   :  { %1608 = vmatmul.mubr.bf16.gmra.mrb[36].mxu0 %v3399_v18  ;;  %1816 = vmatmul.mubr.bf16.gmra.mrb[68].mxu1 %v3399_v18  ;;  %v3051_v18 = vld [vmem:[#allocation8] sm:$0xff]  }
 0x1b1   :  { %1617 = vmatprep.mubr.bf16.mxu0 %v3415_v52  ;;  %1823 = vmatprep.mubr.bf16.mxu1 %v3415_v52  ;;  %v3054_v52 = vld [vmem:[#allocation8 + $0x50] sm:$0xff]  }
 0x1b2   :  { %2638 = vmatpush3.bf16.msra.mxu0 %v3051_v18  ;;  %2722 = vmatpush3.bf16.msra.mxu1 %v3066_v34 }
 0x1b3   :  { %2639 = vmatprep.subr.bf16.mxu0 %v3052_v24  ;;  %2723 = vmatprep.subr.bf16.mxu1 %v3067_v40 }
 0x1b6   :  { %2724 = vmatpush3.bf16.msra.mxu1 %v3067_v40  ;;  %v3510_v40 = vrot.slane %v923_v29, %v203_v38 }
 0x1b7   :  { %2725 = vmatprep.subr.bf16.mxu1 %v3070_v42 }
 0x1b8   :  { %1618 = vmatmul.mubr.bf16.gmra.mrb[40].mxu0 %v3411_v49  ;;  %1824 = vmatmul.mubr.bf16.gmra.mrb[72].mxu1 %v3411_v49  ;;  %v3053_v49 = vld [vmem:[#allocation8 + $0x8] sm:$0xff]  }
 0x1b9   :  { %1627 = vmatprep.mubr.bf16.mxu0 %v3427_v15  ;;  %1831 = vmatprep.mubr.bf16.mxu1 %v3427_v15  ;;  %v3056_v15 = vld [vmem:[#allocation8 + $0x58] sm:$0xff]  }
 0x1ba   :  { %2640 = vmatpush3.bf16.msra.mxu0 %v3053_v49  ;;  %2726 = vmatpush3.bf16.msra.mxu1 %v3070_v42 }
 0x1bb   :  { %2641 = vmatprep.subr.bf16.mxu0 %v3054_v52 }
 0x1c0   :  { %1628 = vmatmul.mubr.bf16.gmra.mrb[44].mxu0 %v3423_v12  ;;  %1832 = vmatmul.mubr.bf16.gmra.mrb[76].mxu1 %v3423_v12  ;;  %v3055_v12 = vld [vmem:[#allocation8 + $0x10] sm:$0xff]  }
 0x1c1   :  { %1637 = vmatprep.mubr.bf16.mxu0 %v782_v48  ;;  %1839 = vmatprep.mubr.bf16.mxu1 %v782_v48 }
 0x1c2   :  { %2642 = vmatpush3.bf16.msra.mxu0 %v3055_v12 }
 0x1c3   :  { %2643 = vmatprep.subr.bf16.mxu0 %v3056_v15 }
 0x1c6   :  { %2644 = vmatpush3.bf16.msra.mxu0 %v3057_v26 }
 0x1c7   :  { %2645 = vmatprep.subr.bf16.mxu0 %v3058_v27 }
 0x1c8   :  { %1638 = vmatmul.mubr.bf16.gmra.mrb[48].mxu0 %v3435_v45  ;;  %1840 = vmatmul.mubr.bf16.gmra.mrb[80].mxu1 %v3435_v45  ;;  %v3071_v45 = vld [vmem:[#allocation8 + $0xa8] sm:$0xff]  }
 0x1c9   :  { %1647 = vmatprep.mubr.bf16.mxu0 %v786_v1  ;;  %1847 = vmatprep.mubr.bf16.mxu1 %v786_v1 }
 0x1ca   :  { %2646 = vmatpush3.bf16.msra.mxu0 %v3059_v28  ;;  %2727 = vmatprep.subr.bf16.mxu1 %v3071_v45 }
 0x1cb   :  { %2647 = vmatprep.subr.bf16.mxu0 %v3061_v30  ;;  %2728 = vmatpush3.bf16.msra.mxu1 %v3071_v45 }
 0x1cc   :  { %2729 = vmatprep.subr.bf16.mxu1 %v3072_v46 }
 0x1ce   :  { %2648 = vmatpush3.bf16.msra.mxu0 %v3062_v31 }
 0x1cf   :  { %2649 = vmatprep.subr.bf16.mxu0 %v3064_v33  ;;  %2730 = vmatpush3.bf16.msra.mxu1 %v3072_v46  ;;  %v3506_v33 = vrot.slane %v923_v29, %v199_v36 }
 0x1d0   :  { %1648 = vmatmul.mubr.bf16.gmra.mrb[52].mxu0 %v785_v0  ;;  %1848 = vmatmul.mubr.bf16.gmra.mrb[84].mxu1 %v785_v0 }
 0x1d1   :  { %1657 = vmatprep.mubr.bf16.mxu0 %v790_v11  ;;  %1855 = vmatprep.mubr.bf16.mxu1 %v790_v11 }
 0x1d2   :  { %2650 = vmatpush3.bf16.msra.mxu0 %v3065_v37  ;;  %2731 = vmatprep.subr.bf16.mxu1 %v3073_v47 }
 0x1d3   :  { %2651 = vmatprep.subr.bf16.mxu0 %v3068_v43  ;;  %2732 = vmatpush3.bf16.msra.mxu1 %v3073_v47 }
 0x1d6   :  { %2652 = vmatpush3.bf16.msra.mxu0 %v3069_v44 }
 0x1d8   :  { %1658 = vmatmul.mubr.bf16.gmra.mrb[56].mxu0 %v789_v10  ;;  %1856 = vmatmul.mubr.bf16.gmra.mrb[88].mxu1 %v789_v10 }
 0x1d9   :  { %1667 = vmatprep.mubr.bf16.mxu0 %v794_v25  ;;  %1863 = vmatprep.mubr.bf16.mxu1 %v794_v25 }
 0x1e0   :  { %1668 = vmatmul.mubr.bf16.gmra.mrb[60].mxu0 %v793_v23  ;;  %1864 = vmatmul.mubr.bf16.gmra.mrb[92].mxu1 %v793_v23 }
 0x23b   :  { %v2525_v48 = vpop.f32.mrb[32].mxu1 }
 0x23c   :  { %v2526_v50 = vpop.f32.mrb[33].mxu1 }
 0x23d   :  { %v2527_v51 = vadd.f32 %v2526_v50, %v2525_v48  ;;  %v2528_v53 = vpop.f32.mrb[34].mxu1 }
 0x23e   :  { %v2529_v55 = vpop.f32.mrb[35].mxu1 }
 0x23f   :  { %v2530_v56 = vadd.f32 %v2529_v55, %v2528_v53  ;;  %v1713_v44 = vadd.f32 %v2527_v51, %v3502_v32 }
 0x241   :  { %v1716_v9 = vadd.f32 %v2530_v56, %v3502_v32 }
 0x243   :  { %v2531_v58 = vpop.f32.mrb[36].mxu1 }
 0x244   :  { %v2532_v39 = vpop.f32.mrb[37].mxu1 }
 0x245   :  { %v3469_v59 = vadd.f32 %v2532_v39, %v2531_v58  ;;  %v2534_v60 = vpop.f32.mrb[38].mxu1 }
 0x246   :  { %v2535_v41 = vpop.f32.mrb[39].mxu1 }
 0x247   :  { %v3471_v61 = vadd.f32 %v2535_v41, %v2534_v60 }
 0x24b   :  { %v2537_v62 = vpop.f32.mrb[40].mxu1 }
 0x24c   :  { %v2538_v63 = vpop.f32.mrb[41].mxu1 }
 0x24d   :  { %v3473_v0 = vadd.f32 %v2538_v63, %v2537_v62  ;;  %v2540_v1 = vpop.f32.mrb[42].mxu1 }
 0x24e   :  { %v2541_v2 = vpop.f32.mrb[43].mxu1 }
 0x24f   :  { %v3475_v3 = vadd.f32 %v2541_v2, %v2540_v1  ;;  %v1721_v2 = vadd.f32 %v3469_v59, %v3502_v32 }
 0x253   :  { %v2543_v4 = vpop.f32.mrb[44].mxu1 }
 0x254   :  { %v2544_v5 = vpop.f32.mrb[45].mxu1 }
 0x255   :  { %v3477_v6 = vadd.f32 %v2544_v5, %v2543_v4  ;;  %v2546_v7 = vpop.f32.mrb[46].mxu1 }
 0x256   :  { %v2547_v8 = vpop.f32.mrb[47].mxu1 }
 0x257   :  { %v3479_v57 = vadd.f32 %v2547_v8, %v2546_v7  ;;  %v1724_v8 = vadd.f32 %v3471_v61, %v3502_v32 }
 0x25b   :  { %v2549_v10 = vpop.f32.mrb[48].mxu1 }
 0x25c   :  { %v2550_v11 = vpop.f32.mrb[49].mxu1 }
 0x25d   :  { %v3481_v13 = vadd.f32 %v2550_v11, %v2549_v10  ;;  %v2552_v14 = vpop.f32.mrb[50].mxu1 }
 0x25e   :  { %v2553_v16 = vpop.f32.mrb[51].mxu1 }
 0x25f   :  { %v3483_v17 = vadd.f32 %v2553_v16, %v2552_v14 }
 0x263   :  { %v2555_v19 = vpop.f32.mrb[52].mxu1 }
 0x264   :  { %v2556_v54 = vpop.f32.mrb[53].mxu1 }
 0x265   :  { %v3485_v20 = vadd.f32 %v2556_v54, %v2555_v19  ;;  %v2558_v22 = vpop.f32.mrb[54].mxu1 }
 0x266   :  { %v2559_v23 = vpop.f32.mrb[55].mxu1 }
 0x267   :  { %v3487_v25 = vadd.f32 %v2559_v23, %v2558_v22 }
 0x26b   :  { %v2561_v21 = vpop.f32.mrb[56].mxu1 }
 0x26c   :  { %v2562_v18 = vpop.f32.mrb[57].mxu1 }
 0x26d   :  { %v3489_v24 = vadd.f32 %v2562_v18, %v2561_v21  ;;  %v2564_v49 = vpop.f32.mrb[58].mxu1 }
 0x26e   :  { %v2565_v52 = vpop.f32.mrb[59].mxu1 }
 0x26f   :  { %v3491_v12 = vadd.f32 %v2565_v52, %v2564_v49 }
 0x273   :  { %v2567_v15 = vpop.f32.mrb[60].mxu1 }
 0x274   :  { %v2568_v26 = vpop.f32.mrb[61].mxu1 }
 0x275   :  { %v3493_v27 = vadd.f32 %v2568_v26, %v2567_v15  ;;  %v2570_v28 = vpop.f32.mrb[62].mxu1 }
 0x276   :  { %v2571_v30 = vpop.f32.mrb[63].mxu1 }
 0x277   :  { %v3498_v31 = vadd.f32 %v2571_v30, %v2570_v28  ;;  %v1729_v28 = vadd.f32 %v3473_v0, %v3502_v32 }
 0x27b   :  { %v1599_v34 = vpop.f32.mrb[32].mxu0  ;;  %v2589_v37 = vpop.f32.mrb[64].mxu1 }
 0x27c   :  { %v1601_v42 = vpop.f32.mrb[33].mxu0  ;;  %v2590_v43 = vpop.f32.mrb[65].mxu1  ;;  %v2749_v48 = vadd.f32 %v1599_v34, %v3506_v33 }
 0x27d   :  { %v2591_v45 = vadd.f32 %v2590_v43, %v2589_v37  ;;  %v1603_v46 = vpop.f32.mrb[34].mxu0  ;;  %v2592_v47 = vpop.f32.mrb[66].mxu1  ;;  %v2750_v55 = vadd.f32 %v1601_v42, %v3510_v40  ;;  %v1732_v37 = vadd.f32 %v3475_v3, %v3502_v32 }
 0x27e   :  { %v2751_v36 = vadd.f32 %v1603_v46, %v3506_v33  ;;  %v1605_v50 = vpop.f32.mrb[35].mxu0  ;;  %v2593_v53 = vpop.f32.mrb[67].mxu1 }
 0x27f   :  { %v1810_v35 = vadd.f32 %v2591_v45, %v1713_v44  ;;  %v2752_v38 = vadd.f32 %v1605_v50, %v3510_v40  ;;  %v2594_v58 = vadd.f32 %v2593_v53, %v2592_v47 }
 0x280   :  { %v1872_v39 = vpack.c.bf16 %v2751_v36, %v2749_v48 }
 0x281   :  { %v1873_v60 = vpack.c.bf16 %v2752_v38, %v2750_v55  ;;  %v1813_v51 = vadd.f32 %v2594_v58, %v1716_v9  ;;  %v1737_v58 = vadd.f32 %v3477_v6, %v3502_v32 }
 0x283   :  { %v1609_v41 = vpop.f32.mrb[36].mxu0  ;;  %v2595_v62 = vpop.f32.mrb[68].mxu1  ;;  %2127 = vmatprep.mubr.bf16.mxu0 %v1873_v60  ;;  %v1874_v63 = vpack.c.bf16 %v1813_v51, %v1810_v35 }
 0x284   :  { %v1611_v56 = vpop.f32.mrb[37].mxu0  ;;  %v2596_v1 = vpop.f32.mrb[69].mxu1  ;;  %2128 = vmatmul.mubr.bf16.vlgmr.msra.gmra.mrb[64].mxu0 %v1872_v39  ;;  %v2753_v10 = vadd.f32 %v1609_v41, %v3506_v33  ;;  %v1740_v41 = vadd.f32 %v3479_v57, %v3502_v32 }
 0x285   :  { %v2597_v4 = vadd.f32 %v2596_v1, %v2595_v62  ;;  %v1613_v5 = vpop.f32.mrb[38].mxu0  ;;  %v2598_v7 = vpop.f32.mrb[70].mxu1  ;;  %2733 = vmatprep.mubr.bf16.mxu1 %v1874_v63  ;;  %v2754_v19 = vadd.f32 %v1611_v56, %v3510_v40 }
 0x286   :  { %v2755_v11 = vadd.f32 %v1613_v5, %v3506_v33  ;;  %v1615_v14 = vpop.f32.mrb[39].mxu0  ;;  %v2599_v16 = vpop.f32.mrb[71].mxu1 }
 0x287   :  { %v1818_v54 = vadd.f32 %v2597_v4, %v1721_v2  ;;  %v2756_v22 = vadd.f32 %v1615_v14, %v3510_v40  ;;  %v2600_v23 = vadd.f32 %v2599_v16, %v2598_v7 }
 0x288   :  { %v1875_v59 = vpack.c.bf16 %v2755_v11, %v2753_v10 }
 0x289   :  { %v1876_v21 = vpack.c.bf16 %v2756_v22, %v2754_v19  ;;  %v1821_v18 = vadd.f32 %v2600_v23, %v1724_v8 }
 0x28b   :  { %v1877_v49 = vpack.c.bf16 %v1821_v18, %v1818_v54  ;;  %v1619_v52 = vpop.f32.mrb[40].mxu0  ;;  %v2601_v15 = vpop.f32.mrb[72].mxu1  ;;  %2135 = vmatprep.mubr.bf16.mxu0 %v1876_v21  ;;  %v1745_v54 = vadd.f32 %v3481_v13, %v3502_v32  ;;  %v1748_v21 = vadd.f32 %v3483_v17, %v3502_v32 }
 0x28c   :  { %v1621_v61 = vpop.f32.mrb[41].mxu0  ;;  %v2602_v26 = vpop.f32.mrb[73].mxu1  ;;  %2136 = vmatmul.mubr.bf16.gmra.mrb[68].mxu0 %v1875_v59  ;;  %v2757_v42 = vadd.f32 %v1619_v52, %v3506_v33 }
 0x28d   :  { %v2603_v29 = vadd.f32 %v2602_v26, %v2601_v15  ;;  %v1623_v30 = vpop.f32.mrb[42].mxu0  ;;  %v2604_v34 = vpop.f32.mrb[74].mxu1  ;;  %2734 = vmatmul.mubr.bf16.vlgmr.msra.gmra.mrb[96].mxu1 %v1877_v49  ;;  %v2758_v46 = vadd.f32 %v1621_v61, %v3510_v40 }
 0x28e   :  { %v2759_v43 = vadd.f32 %v1623_v30, %v3506_v33  ;;  %v1625_v44 = vpop.f32.mrb[43].mxu0  ;;  %v2605_v45 = vpop.f32.mrb[75].mxu1 }
 0x28f   :  { %v1826_v47 = vadd.f32 %v2603_v29, %v1729_v28  ;;  %v2760_v9 = vadd.f32 %v1625_v44, %v3510_v40  ;;  %v2606_v48 = vadd.f32 %v2605_v45, %v2604_v34  ;;  %v1753_v45 = vadd.f32 %v3485_v20, %v3502_v32 }
 0x290   :  { %v1878_v0 = vpack.c.bf16 %v2759_v43, %v2757_v42 }
 0x291   :  { %v1879_v36 = vpack.c.bf16 %v2760_v9, %v2758_v46  ;;  %v1829_v50 = vadd.f32 %v2606_v48, %v1732_v37  ;;  %v1756_v48 = vadd.f32 %v3487_v25, %v3502_v32 }
 0x293   :  { %v1629_v53 = vpop.f32.mrb[44].mxu0  ;;  %v2607_v55 = vpop.f32.mrb[76].mxu1  ;;  %2143 = vmatprep.mubr.bf16.mxu0 %v1879_v36  ;;  %v1880_v35 = vpack.c.bf16 %v1829_v50, %v1826_v47 }
 0x294   :  { %v1631_v3 = vpop.f32.mrb[45].mxu0  ;;  %v2608_v38 = vpop.f32.mrb[77].mxu1  ;;  %2144 = vmatmul.mubr.bf16.gmra.mrb[72].mxu0 %v1878_v0  ;;  %v2761_v62 = vadd.f32 %v1629_v53, %v3506_v33 }
 0x295   :  { %v2609_v39 = vadd.f32 %v2608_v38, %v2607_v55  ;;  %v1633_v60 = vpop.f32.mrb[46].mxu0  ;;  %v2610_v51 = vpop.f32.mrb[78].mxu1  ;;  %2737 = vmatprep.mubr.bf16.mxu1 %v1880_v35  ;;  %v2762_v2 = vadd.f32 %v1631_v3, %v3510_v40 }
 0x296   :  { %v2763_v63 = vadd.f32 %v1633_v60, %v3506_v33  ;;  %v1635_v56 = vpop.f32.mrb[47].mxu0  ;;  %v2611_v1 = vpop.f32.mrb[79].mxu1 }
 0x297   :  { %v1834_v4 = vadd.f32 %v2609_v39, %v1737_v58  ;;  %v2764_v5 = vadd.f32 %v1635_v56, %v3510_v40  ;;  %v2612_v7 = vadd.f32 %v2611_v1, %v2610_v51 }
 0x298   :  { %v1881_v6 = vpack.c.bf16 %v2763_v63, %v2761_v62  ;;  %v1761_v63 = vadd.f32 %v3489_v24, %v3502_v32 }
 0x299   :  { %v1882_v8 = vpack.c.bf16 %v2764_v5, %v2762_v2  ;;  %v1837_v10 = vadd.f32 %v2612_v7, %v1740_v41 }
 0x29b   :  { %v1639_v11 = vpop.f32.mrb[48].mxu0  ;;  %v2613_v14 = vpop.f32.mrb[80].mxu1  ;;  %2151 = vmatprep.mubr.bf16.mxu0 %v1882_v8  ;;  %v1883_v16 = vpack.c.bf16 %v1837_v10, %v1834_v4  ;;  %v1764_v4 = vadd.f32 %v3491_v12, %v3502_v32 }
 0x29c   :  { %v1641_v57 = vpop.f32.mrb[49].mxu0  ;;  %v2614_v19 = vpop.f32.mrb[81].mxu1  ;;  %2152 = vmatmul.mubr.bf16.gmra.mrb[76].mxu0 %v1881_v6  ;;  %v2765_v18 = vadd.f32 %v1639_v11, %v3506_v33 }
 0x29d   :  { %v2615_v22 = vadd.f32 %v2614_v19, %v2613_v14  ;;  %v1643_v23 = vpop.f32.mrb[50].mxu0  ;;  %v2616_v59 = vpop.f32.mrb[82].mxu1  ;;  %2738 = vmatmul.mubr.bf16.gmra.mrb[100].mxu1 %v1883_v16  ;;  %v2766_v61 = vadd.f32 %v1641_v57, %v3510_v40 }
 0x29e   :  { %v2767_v49 = vadd.f32 %v1643_v23, %v3506_v33  ;;  %v1645_v52 = vpop.f32.mrb[51].mxu0  ;;  %v2617_v15 = vpop.f32.mrb[83].mxu1 }
 0x29f   :  { %v1842_v26 = vadd.f32 %v2615_v22, %v1745_v54  ;;  %v2768_v28 = vadd.f32 %v1645_v52, %v3510_v40  ;;  %v2618_v29 = vadd.f32 %v2617_v15, %v2616_v59  ;;  %v1772_v15 = vadd.f32 %v3498_v31, %v3502_v32 }
 0x2a0   :  { %v1884_v13 = vpack.c.bf16 %v2767_v49, %v2765_v18 }
 0x2a1   :  { %v1885_v30 = vpack.c.bf16 %v2768_v28, %v2766_v61  ;;  %v1845_v34 = vadd.f32 %v2618_v29, %v1748_v21  ;;  %v1769_v21 = vadd.f32 %v3493_v27, %v3502_v32 }
 0x2a3   :  { %v1649_v37 = vpop.f32.mrb[52].mxu0  ;;  %v2619_v42 = vpop.f32.mrb[84].mxu1  ;;  %2159 = vmatprep.mubr.bf16.mxu0 %v1885_v30  ;;  %v1886_v43 = vpack.c.bf16 %v1845_v34, %v1842_v26 }
 0x2a4   :  { %v1651_v17 = vpop.f32.mrb[53].mxu0  ;;  %v2620_v44 = vpop.f32.mrb[85].mxu1  ;;  %2160 = vmatmul.mubr.bf16.gmra.mrb[80].mxu0 %v1884_v13  ;;  %v2769_v0 = vadd.f32 %v1649_v37, %v3506_v33 }
 0x2a5   :  { %v2621_v46 = vadd.f32 %v2620_v44, %v2619_v42  ;;  %v1653_v47 = vpop.f32.mrb[54].mxu0  ;;  %v2622_v9 = vpop.f32.mrb[86].mxu1  ;;  %2741 = vmatprep.mubr.bf16.mxu1 %v1886_v43  ;;  %v2770_v55 = vadd.f32 %v1651_v17, %v3510_v40 }
 0x2a6   :  { %v2771_v36 = vadd.f32 %v1653_v47, %v3506_v33  ;;  %v1655_v50 = vpop.f32.mrb[55].mxu0  ;;  %v2623_v53 = vpop.f32.mrb[87].mxu1  ;;  %v3577_v47 = vld [vmem:[%s3613_s6] ss:$0 sm:$0xff]  ;;  %s3202_s6 = smov [#allocation10]  }
 0x2a7   :  { %v1850_v35 = vadd.f32 %v2621_v46, %v1753_v45  ;;  %v2772_v3 = vadd.f32 %v1655_v50, %v3510_v40  ;;  %v2624_v38 = vadd.f32 %v2623_v53, %v2622_v9  ;;  %s2310_s9 = sshll.u32 %s3202_s6, 4  ;;  %s2311_s9 = int_to_ptr.vmem [resolvable:$true] %s2310_s9 }
 0x2a8   :  { %v1887_v20 = vpack.c.bf16 %v2771_v36, %v2769_v0  ;;  %s3162_s10 = scalar_lea.vmem %s2311_s9, 2048  ;;  %p3167_p5 = scmp.lt.s32.totalorder %s2311_s9, %s2311_s9 }
 0x2a9   :  { %v1888_v58 = vpack.c.bf16 %v2772_v3, %v2770_v55  ;;  %v1853_v39 = vadd.f32 %v2624_v38, %v1756_v48  ;;  %p3163_p4 = scmp.ne.s32.totalorder %s2311_s9, %s3162_s10  ;;  %p3168_p6 = scmp.lt.s32.totalorder %s3162_s10, %s3162_s10 }
 0x2ab   :  { %v1659_v60 = vpop.f32.mrb[56].mxu0  ;;  %v2625_v51 = vpop.f32.mrb[88].mxu1  ;;  %2167 = vmatprep.mubr.bf16.mxu0 %v1888_v58  ;;  %v1889_v41 = vpack.c.bf16 %v1853_v39, %v1850_v35  ;;  %p3169_p7 = por %p3168_p6, %p3167_p5 }
 0x2ac   :  { %v1661_v25 = vpop.f32.mrb[57].mxu0  ;;  %v2626_v62 = vpop.f32.mrb[89].mxu1  ;;  %2168 = vmatmul.mubr.bf16.gmra.mrb[84].mxu0 %v1887_v20  ;;  %v2773_v5 = vadd.f32 %v1659_v60, %v3506_v33 }
 0x2ad   :  { %v2627_v56 = vadd.f32 %v2626_v62, %v2625_v51  ;;  %v1663_v1 = vpop.f32.mrb[58].mxu0  ;;  %v2628_v2 = vpop.f32.mrb[90].mxu1  ;;  %2742 = vmatmul.mubr.bf16.gmra.mrb[104].mxu1 %v1889_v41  ;;  %v2774_v10 = vadd.f32 %v1661_v25, %v3510_v40  ;;  %p3170_p8 = pnand %p3169_p7, %p3163_p4 }
 0x2ae   :  { %v2775_v7 = vadd.f32 %v1663_v1, %v3506_v33  ;;  %v1665_v6 = vpop.f32.mrb[59].mxu0  ;;  %v2629_v8 = vpop.f32.mrb[91].mxu1 }
 0x2af   :  { %v1858_v11 = vadd.f32 %v2627_v56, %v1761_v63  ;;  %v2776_v14 = vadd.f32 %v1665_v6, %v3510_v40  ;;  %v2630_v16 = vadd.f32 %v2629_v8, %v2628_v2 }
 0x2b0   :  { %v1890_v24 = vpack.c.bf16 %v2775_v7, %v2773_v5 }
 0x2b1   :  { %v1891_v57 = vpack.c.bf16 %v2776_v14, %v2774_v10  ;;  %v1861_v19 = vadd.f32 %v2630_v16, %v1764_v4 }
 0x2b3   :  { %v1669_v54 = vpop.f32.mrb[60].mxu0  ;;  %v2631_v22 = vpop.f32.mrb[92].mxu1  ;;  %2175 = vmatprep.mubr.bf16.mxu0 %v1891_v57  ;;  %v1892_v23 = vpack.c.bf16 %v1861_v19, %v1858_v11 }
 0x2b4   :  { %v1671_v12 = vpop.f32.mrb[61].mxu0  ;;  %v2632_v59 = vpop.f32.mrb[93].mxu1  ;;  %2176 = vmatmul.mubr.bf16.gmra.mrb[88].mxu0 %v1890_v24  ;;  %v2777_v61 = vadd.f32 %v1669_v54, %v3506_v33 }
 0x2b5   :  { %v2633_v18 = vadd.f32 %v2632_v59, %v2631_v22  ;;  %v1673_v49 = vpop.f32.mrb[62].mxu0  ;;  %v2634_v52 = vpop.f32.mrb[94].mxu1  ;;  %2745 = vmatprep.mubr.bf16.mxu1 %v1892_v23  ;;  %v2778_v13 = vadd.f32 %v1671_v12, %v3510_v40 }
 0x2b6   :  { %v2779_v26 = vadd.f32 %v1673_v49, %v3506_v33  ;;  %v1675_v28 = vpop.f32.mrb[63].mxu0  ;;  %v2635_v29 = vpop.f32.mrb[95].mxu1 }
 0x2b7   :  { %v1866_v30 = vadd.f32 %v2633_v18, %v1769_v21  ;;  %v2780_v34 = vadd.f32 %v1675_v28, %v3510_v40  ;;  %v2636_v37 = vadd.f32 %v2635_v29, %v2634_v52 }
 0x2b8   :  { %v1893_v27 = vpack.c.bf16 %v2779_v26, %v2777_v61 }
 0x2b9   :  { %v1894_v42 = vpack.c.bf16 %v2780_v34, %v2778_v13  ;;  %v1869_v43 = vadd.f32 %v2636_v37, %v1772_v15 }
 0x2bb   :  { %2183 = vmatprep.mubr.bf16.mxu0 %v1894_v42  ;;  %v1895_v17 = vpack.c.bf16 %v1869_v43, %v1866_v30 }
 0x2bc   :  { %2184 = vmatmul.mubr.bf16.gmra.mrb[92].mxu0 %v1893_v27 }
 0x2bd   :  { %2746 = vmatmul.mubr.bf16.gmra.mrb[108].mxu1 %v1895_v17 }
 0x357   :  { %v2653_v31 = vpop.f32.mrb[64].mxu0 }
 0x358   :  { %v2654_v32 = vpop.f32.mrb[65].mxu0 }
 0x359   :  { %v2655_v44 = vadd.f32 %v2654_v32, %v2653_v31  ;;  %v2656_v45 = vpop.f32.mrb[66].mxu0 }
 0x35a   :  { %v2657_v33 = vpop.f32.mrb[67].mxu0 }
 0x35b   :  { %v2658_v46 = vadd.f32 %v2657_v33, %v2656_v45  ;;  %v2130_v0 = vadd.f32 %v2655_v44, %v3577_v47 }
 0x35d   :  { %v2133_v38 = vadd.f32 %v2658_v46, %v3577_v47 }
 0x35f   :  { %v2659_v40 = vpop.f32.mrb[68].mxu0 }
 0x360   :  { %v2660_v9 = vpop.f32.mrb[69].mxu0  ;;  %v2735_v48 = vpop.f32.mrb[96].mxu1 }
 0x361   :  { %v2661_v36 = vadd.f32 %v2660_v9, %v2659_v40  ;;  %v2662_v50 = vpop.f32.mrb[70].mxu0  ;;  %v2226_v53 = vpop.f32.mrb[97].mxu1 }
 0x362   :  { %v2227_v55 = vadd.f32 %v2226_v53, %v2130_v0  ;;  %v2663_v35 = vpop.f32.mrb[71].mxu0  ;;  %v2736_v3 = vpop.f32.mrb[98].mxu1 }
 0x363   :  { %v2138_v20 = vadd.f32 %v2661_v36, %v3577_v47  ;;  %v2664_v58 = vadd.f32 %v2663_v35, %v2662_v50  ;;  %v2229_v39 = vpop.f32.mrb[99].mxu1 }
 0x364   :  { %2289 = vst [vmem:[#allocation10] sm:$0xff] %v2227_v55  ;;  %v2230_v60 = vadd.f32 %v2229_v39, %v2133_v38 }
 0x365   :  { %v2235_v51 = vadd.f32 %v2735_v48, %v2138_v20  ;;  %v2141_v41 = vadd.f32 %v2664_v58, %v3577_v47 }
 0x366   :  { %2290 = vst [vmem:[#allocation10 + $0x8] sm:$0xff] %v2230_v60 }
 0x367   :  { %2291 = vst [vmem:[#allocation10 + $0x10] sm:$0xff] %v2235_v51  ;;  %v2238_v25 = vadd.f32 %v2736_v3, %v2141_v41  ;;  %v2665_v62 = vpop.f32.mrb[72].mxu0 }
 0x368   :  { %v2666_v63 = vpop.f32.mrb[73].mxu0 }
 0x369   :  { %2292 = vst [vmem:[#allocation10 + $0x18] sm:$0xff] %v2238_v25  ;;  %v2667_v56 = vadd.f32 %v2666_v63, %v2665_v62  ;;  %v2668_v1 = vpop.f32.mrb[74].mxu0 }
 0x36a   :  { %v2669_v2 = vpop.f32.mrb[75].mxu0 }
 0x36b   :  { %v2670_v4 = vadd.f32 %v2669_v2, %v2668_v1  ;;  %v2146_v8 = vadd.f32 %v2667_v56, %v3577_v47 }
 0x36d   :  { %v2149_v19 = vadd.f32 %v2670_v4, %v3577_v47 }
 0x36f   :  { %v2671_v5 = vpop.f32.mrb[76].mxu0 }
 0x370   :  { %v2672_v7 = vpop.f32.mrb[77].mxu0  ;;  %v2739_v6 = vpop.f32.mrb[100].mxu1 }
 0x371   :  { %v2673_v10 = vadd.f32 %v2672_v7, %v2671_v5  ;;  %v2674_v11 = vpop.f32.mrb[78].mxu0  ;;  %v2242_v14 = vpop.f32.mrb[101].mxu1 }
 0x372   :  { %v2243_v16 = vadd.f32 %v2242_v14, %v2146_v8  ;;  %v2675_v24 = vpop.f32.mrb[79].mxu0  ;;  %v2740_v57 = vpop.f32.mrb[102].mxu1 }
 0x373   :  { %v2154_v54 = vadd.f32 %v2673_v10, %v3577_v47  ;;  %v2676_v22 = vadd.f32 %v2675_v24, %v2674_v11  ;;  %v2245_v23 = vpop.f32.mrb[103].mxu1 }
 0x374   :  { %2293 = vst [vmem:[#allocation10 + $0x20] sm:$0xff] %v2243_v16  ;;  %v2246_v12 = vadd.f32 %v2245_v23, %v2149_v19 }
 0x375   :  { %v2251_v59 = vadd.f32 %v2739_v6, %v2154_v54  ;;  %v2157_v21 = vadd.f32 %v2676_v22, %v3577_v47 }
 0x376   :  { %2294 = vst [vmem:[#allocation10 + $0x28] sm:$0xff] %v2246_v12 }
 0x377   :  { %2295 = vst [vmem:[#allocation10 + $0x30] sm:$0xff] %v2251_v59  ;;  %v2254_v18 = vadd.f32 %v2740_v57, %v2157_v21  ;;  %v2677_v49 = vpop.f32.mrb[80].mxu0 }
 0x378   :  { %v2678_v52 = vpop.f32.mrb[81].mxu0 }
 0x379   :  { %2296 = vst [vmem:[#allocation10 + $0x38] sm:$0xff] %v2254_v18  ;;  %v2679_v15 = vadd.f32 %v2678_v52, %v2677_v49  ;;  %v2680_v61 = vpop.f32.mrb[82].mxu0 }
 0x37a   :  { %v2681_v26 = vpop.f32.mrb[83].mxu0 }
 0x37b   :  { %v2682_v28 = vadd.f32 %v2681_v26, %v2680_v61  ;;  %v2162_v34 = vadd.f32 %v2679_v15, %v3577_v47 }
 0x37d   :  { %v2165_v32 = vadd.f32 %v2682_v28, %v3577_v47 }
 0x37f   :  { %v2683_v29 = vpop.f32.mrb[84].mxu0 }
 0x380   :  { %v2684_v13 = vpop.f32.mrb[85].mxu0  ;;  %v2743_v30 = vpop.f32.mrb[104].mxu1 }
 0x381   :  { %v2685_v37 = vadd.f32 %v2684_v13, %v2683_v29  ;;  %v2686_v27 = vpop.f32.mrb[86].mxu0  ;;  %v2258_v42 = vpop.f32.mrb[105].mxu1 }
 0x382   :  { %v2259_v43 = vadd.f32 %v2258_v42, %v2162_v34  ;;  %v2687_v17 = vpop.f32.mrb[87].mxu0  ;;  %v2744_v31 = vpop.f32.mrb[106].mxu1 }
 0x383   :  { %v2170_v44 = vadd.f32 %v2685_v37, %v3577_v47  ;;  %v2688_v45 = vadd.f32 %v2687_v17, %v2686_v27  ;;  %v2261_v33 = vpop.f32.mrb[107].mxu1 }
 0x384   :  { %2297 = vst [vmem:[#allocation10 + $0x40] sm:$0xff] %v2259_v43  ;;  %v2262_v46 = vadd.f32 %v2261_v33, %v2165_v32 }
 0x385   :  { %v2267_v40 = vadd.f32 %v2743_v30, %v2170_v44  ;;  %v2173_v9 = vadd.f32 %v2688_v45, %v3577_v47 }
 0x386   :  { %2298 = vst [vmem:[#allocation10 + $0x48] sm:$0xff] %v2262_v46 }
 0x387   :  { %2299 = vst [vmem:[#allocation10 + $0x50] sm:$0xff] %v2267_v40  ;;  %v2270_v48 = vadd.f32 %v2744_v31, %v2173_v9  ;;  %v2689_v0 = vpop.f32.mrb[88].mxu0 }
 0x388   :  { %v2690_v36 = vpop.f32.mrb[89].mxu0 }
 0x389   :  { %2300 = vst [vmem:[#allocation10 + $0x58] sm:$0xff] %v2270_v48  ;;  %v2691_v50 = vadd.f32 %v2690_v36, %v2689_v0  ;;  %v2692_v53 = vpop.f32.mrb[90].mxu0 }
 0x38a   :  { %v2693_v55 = vpop.f32.mrb[91].mxu0 }
 0x38b   :  { %v2694_v35 = vadd.f32 %v2693_v55, %v2692_v53  ;;  %v2178_v58 = vadd.f32 %v2691_v50, %v3577_v47 }
 0x38d   :  { %v2181_v63 = vadd.f32 %v2694_v35, %v3577_v47 }
 0x38f   :  { %v2695_v3 = vpop.f32.mrb[92].mxu0 }
 0x390   :  { %v2696_v38 = vpop.f32.mrb[93].mxu0  ;;  %v2747_v20 = vpop.f32.mrb[108].mxu1 }
 0x391   :  { %v2697_v39 = vadd.f32 %v2696_v38, %v2695_v3  ;;  %v2698_v60 = vpop.f32.mrb[94].mxu0  ;;  %v2274_v51 = vpop.f32.mrb[109].mxu1 }
 0x392   :  { %v2275_v41 = vadd.f32 %v2274_v51, %v2178_v58  ;;  %v2699_v25 = vpop.f32.mrb[95].mxu0  ;;  %v2748_v62 = vpop.f32.mrb[110].mxu1 }
 0x393   :  { %v2186_v56 = vadd.f32 %v2697_v39, %v3577_v47  ;;  %v2700_v1 = vadd.f32 %v2699_v25, %v2698_v60  ;;  %v2277_v2 = vpop.f32.mrb[111].mxu1 }
 0x394   :  { %2301 = vst [vmem:[#allocation10 + $0x60] sm:$0xff] %v2275_v41  ;;  %v2278_v4 = vadd.f32 %v2277_v2, %v2181_v63 }
 0x395   :  { %v2283_v5 = vadd.f32 %v2747_v20, %v2186_v56  ;;  %v2189_v7 = vadd.f32 %v2700_v1, %v3577_v47 }
 0x396   :  { %2302 = vst [vmem:[#allocation10 + $0x68] sm:$0xff] %v2278_v4 }
 0x397   :  { %2303 = vst [vmem:[#allocation10 + $0x70] sm:$0xff] %v2283_v5  ;;  %v2286_v6 = vadd.f32 %v2748_v62, %v2189_v7 }
 0x399   :  { %2304 = vst [vmem:[#allocation10 + $0x78] sm:$0xff] %v2286_v6 }
 0x39a   :  { %3173 = shalt.err (!%p3170_p8)
}
 0x39b   :  { %s3174_s15 = scalar_lea.hbm %s3614_s7, 2048 }
 0x39c   :  { %p3175_p9 = scmp.ne.s32.totalorder %s3614_s7, %s3174_s15  ;;  %p3178_p10 = scmp.lt.u32.totalorder %s3174_s15, %s3614_s7 }
 0x39e   :  { %p3180_p11 = pnand %p3178_p10, %p3175_p9 }
 0x3a0   :  { %3183 = shalt.err (!%p3180_p11)
}
 0x3a1   :  { %s3203_s16 = smov 128   ;;  %s3204_s17 = smov 8  }
 0x3a2   :  { %2316 = dma.vmem_to_hbm [thread:$0]  %s2311_s9, 2048, %s3614_s7, [#allocation4], %s3203_s16, %s3203_s16, %s3204_s17  }
 0x3a3   :  { %3190 = dma.done.wait [#allocation4], 2048  }
 0x3a4   :  { %3191 = vsyncadd [#allocation4], 4294965248 }
 0x3a5   :  { %2320 = vsyncpa [#allocation3], 1 }
 0x3a6   :  { %2321 = vsyncpa [#allocation6], 1 }
 0x3a7   :  { %2322 = vsyncpa [#allocation9], 1 }
 0x3a8   :  { %2323 = vsyncpa [#allocation4], 1 }

</bundles_post_ra>
